<compile_context>
chip_gen: v5e
topology: v5e:2x2
jax: 0.10.0
libtpu: 0.0.40
codegen_flags: <defaults>
</compile_context>

<pallas_src>
import jax
import jax.numpy as jnp
from jax.experimental import pallas as pl
from jax.experimental.pallas import tpu as pltpu

NEG_SLOPE = 0.01      # torch.nn.LeakyReLU default
LN_EPS = 1e-5         # torch.nn.LayerNorm default


def _leaky_relu(x):
    return jnp.where(x > 0, x, NEG_SLOPE * x)


def _round_up(n, m):
    return ((n + m - 1) // m) * m


def edge_mlp_kernel(src_ref, dest_ref, edge_ref,
                    w0s_ref, w0d_ref, w0e_ref, b0_ref,
                    w1_ref, b1_ref,
                    w2_ref, b2_ref,
                    gamma_ref, beta_ref,
                    o_ref):
    """(fused concat) -> Lin -> LeakyReLU -> Lin -> LeakyReLU -> Lin -> LeakyReLU -> LayerNorm."""
    f32 = jnp.float32

    # Layer 0: cat([src, dest, edge]) @ w0  ==  src@w0s + dest@w0d + edge@w0e.
    h = (jnp.dot(src_ref[...], w0s_ref[...], preferred_element_type=f32)
         + jnp.dot(dest_ref[...], w0d_ref[...], preferred_element_type=f32)
         + jnp.dot(edge_ref[...], w0e_ref[...], preferred_element_type=f32)
         + b0_ref[...])
    h = _leaky_relu(h)                                    # elementwise stays f32 (v5e-safe)

    # Layer 1
    h = jnp.dot(h.astype(w1_ref.dtype), w1_ref[...], preferred_element_type=f32) + b1_ref[...]
    h = _leaky_relu(h)

    # Layer 2 (output layer), activate_last=True
    y = jnp.dot(h.astype(w2_ref.dtype), w2_ref[...], preferred_element_type=f32) + b2_ref[...]
    y = _leaky_relu(y)

    # LayerNorm over out_size features (all lanes are valid — no padding mask needed).
    mean = jnp.mean(y, axis=-1, keepdims=True)
    centered = y - mean
    var = jnp.mean(centered * centered, axis=-1, keepdims=True)
    y = centered * jax.lax.rsqrt(var + LN_EPS)            # rsqrt -> EUP slot
    o_ref[...] = (y * gamma_ref[...] + beta_ref[...]).astype(o_ref.dtype)


def edge_model_forward(src, dest, edge_attr, u, batch, params,
                       *, tile_rows=1024, use_bf16=False):
    """Pallas implementation of EdgeModel.forward (u, batch unused, as in torch)."""
    del u, batch
    (w0, b0), (w1, b1), (w2, b2), (gamma, beta) = params

    E, f_src = src.shape
    f_dst = dest.shape[1]
    f_edge = edge_attr.shape[1]
    hidden = w0.shape[1]
    out_size = w2.shape[1]

    # Split w0 into row blocks (fuses the concat into three accumulated matmuls).
    w0s = w0[:f_src]
    w0d = w0[f_src:f_src + f_dst]
    w0e = w0[f_src + f_dst:]

    # bf16 feed for the MXU on v6e/v7x (memory-bound); accumulation stays f32.
    in_dtype = jnp.bfloat16 if use_bf16 else jnp.float32

    # Big row tiles (per-grid-step overhead ~0.35us) clamped for tiny inputs; pad the
    # edge dim so every tile is full (tail handling with no divisibility assert).
    tile_rows = max(8, min(tile_rows, _round_up(E, 8)))
    E_pad = _round_up(E, tile_rows)

    def pad_rows(a):
        if a.shape[0] == E_pad:
            return a
        return jnp.pad(a, ((0, E_pad - a.shape[0]), (0, 0)))

    src_p = pad_rows(src.astype(in_dtype))
    dest_p = pad_rows(dest.astype(in_dtype))
    edge_p = pad_rows(edge_attr.astype(in_dtype))

    grid = (E_pad // tile_rows,)

    def row_spec(f):
        return pl.BlockSpec((tile_rows, f), lambda i: (i, 0))

    def full(shape):
        return pl.BlockSpec(shape, lambda i: tuple(0 for _ in shape))

    in_specs = [
        row_spec(f_src), row_spec(f_dst), row_spec(f_edge),
        full(w0s.shape), full(w0d.shape), full(w0e.shape), full((1, hidden)),
        full(w1.shape), full((1, hidden)),
        full(w2.shape), full((1, out_size)),
        full((1, out_size)), full((1, out_size)),
    ]
    out_spec = pl.BlockSpec((tile_rows, out_size), lambda i: (i, 0))

    out_padded = pl.pallas_call(
        edge_mlp_kernel,
        out_shape=jax.ShapeDtypeStruct((E_pad, out_size), jnp.float32),
        grid_spec=pltpu.PrefetchScalarGridSpec(
            num_scalar_prefetch=0,
            grid=grid,
            in_specs=in_specs,
            out_specs=out_spec,
        ),
        compiler_params=pltpu.CompilerParams(
            dimension_semantics=("parallel",)),
    )(src_p, dest_p, edge_p,
      w0s.astype(in_dtype), w0d.astype(in_dtype), w0e.astype(in_dtype),
      b0.reshape(1, -1).astype(jnp.float32),
      w1.astype(in_dtype), b1.reshape(1, -1).astype(jnp.float32),
      w2.astype(in_dtype), b2.reshape(1, -1).astype(jnp.float32),
      gamma.reshape(1, -1).astype(jnp.float32),
      beta.reshape(1, -1).astype(jnp.float32))

    # Drop the row padding only (output is already lane-exact).
    return out_padded[:E] if E_pad != E else out_padded


def init_params(key, in_size, out_size, n_hidden, hidden_size):
    """Deterministic init mimicking torch Linear defaults (uniform +/- 1/sqrt(fan_in))."""
    assert n_hidden == 2, "this script instantiates the MLP with n_hidden=2"
    keys = jax.random.split(key, 6)

    def lin(kw, kb, fan_in, fan_out):
        bound = 1.0 / jnp.sqrt(fan_in)
        w = jax.random.uniform(kw, (fan_in, fan_out), jnp.float32, -bound, bound)
        b = jax.random.uniform(kb, (fan_out,), jnp.float32, -bound, bound)
        return w, b

    l0 = lin(keys[0], keys[1], in_size, hidden_size)
    l1 = lin(keys[2], keys[3], hidden_size, hidden_size)
    l2 = lin(keys[4], keys[5], hidden_size, out_size)
    gamma = jnp.ones((out_size,), jnp.float32)
    beta = jnp.zeros((out_size,), jnp.float32)
    return (l0, l1, l2, (gamma, beta))


def reference_forward(src, dest, edge_attr, params, dtype=jnp.float32):
    """Plain-JAX reference mirroring the kernel's casting (f32 accumulation)."""
    (w0, b0), (w1, b1), (w2, b2), (gamma, beta) = params
    x = jnp.concatenate([src, dest, edge_attr], axis=1)

    def dot(a, w):
        return jnp.dot(a.astype(dtype), w.astype(dtype),
                       preferred_element_type=jnp.float32)

    h = _leaky_relu(dot(x, w0) + b0)
    h = _leaky_relu(dot(h, w1) + b1)
    y = _leaky_relu(dot(h, w2) + b2)
    mean = jnp.mean(y, axis=-1, keepdims=True)
    var = jnp.mean((y - mean) ** 2, axis=-1, keepdims=True)
    y = (y - mean) * jax.lax.rsqrt(var + LN_EPS)
    return y * gamma + beta


if __name__ == "__main__":
    # Small, MLP-consistent shapes: E edges, node features F_n, edge features F_e.
    E, F_n, F_e = 200, 8, 8
    n_hidden, hidden_size, out_size = 2, 32, 8
    in_size = 2 * F_n + F_e  # cat([src, dest, edge_attr], 1)

    key = jax.random.PRNGKey(0)
    k_src, k_dst, k_edge, k_u, k_param = jax.random.split(key, 5)

    src = jax.random.normal(k_src, (E, F_n), jnp.float32)
    dest = jax.random.normal(k_dst, (E, F_n), jnp.float32)
    edge_attr = jax.random.normal(k_edge, (E, F_e), jnp.float32)
    u = jax.random.normal(k_u, (2, 4), jnp.float32)          # unused (as in torch)
    batch = jnp.zeros((E,), jnp.int32)                        # unused (as in torch)

    params = init_params(k_param, in_size, out_size, n_hidden, hidden_size)

    # f32 path (strict numerical check).
    out = jax.block_until_ready(
        edge_model_forward(src, dest, edge_attr, u, batch, params))
    ref = reference_forward(src, dest, edge_attr, params)
    assert out.shape == (E, out_size)
    assert jnp.allclose(out, ref, atol=2e-5, rtol=2e-5), "f32 mismatch vs JAX reference"

    # bf16 feed path (v6e/v7x memory-bound roofline), checked vs bf16-matched reference.
    out_bf16 = jax.block_until_ready(
        edge_model_forward(src, dest, edge_attr, u, batch, params, use_bf16=True))
    ref_bf16 = reference_forward(src, dest, edge_attr, params, dtype=jnp.bfloat16)
    assert out_bf16.shape == (E, out_size)
    assert jnp.allclose(out_bf16, ref_bf16, atol=3e-2, rtol=3e-2), "bf16 mismatch vs reference"

    print("KERNEL_OK")
</pallas_src>

<mosaic_0001>
module attributes {stable_mosaic.version = 11 : i64} {
  func.func @edge_mlp_kernel(%arg0: i32, %arg1: memref<200x8xf32, #tpu.memory_space<vmem>>, %arg2: memref<200x8xf32, #tpu.memory_space<vmem>>, %arg3: memref<200x8xf32, #tpu.memory_space<vmem>>, %arg4: memref<8x32xf32, #tpu.memory_space<vmem>>, %arg5: memref<8x32xf32, #tpu.memory_space<vmem>>, %arg6: memref<8x32xf32, #tpu.memory_space<vmem>>, %arg7: memref<1x32xf32, #tpu.memory_space<vmem>>, %arg8: memref<32x32xf32, #tpu.memory_space<vmem>>, %arg9: memref<1x32xf32, #tpu.memory_space<vmem>>, %arg10: memref<32x8xf32, #tpu.memory_space<vmem>>, %arg11: memref<1x8xf32, #tpu.memory_space<vmem>>, %arg12: memref<1x8xf32, #tpu.memory_space<vmem>>, %arg13: memref<1x8xf32, #tpu.memory_space<vmem>>, %arg14: memref<200x8xf32, #tpu.memory_space<vmem>>) attributes {dimension_semantics = [#tpu.dimension_semantics<parallel>], iteration_bounds = array<i64: 1>, scalar_prefetch = 0 : i64, scratch_operands = 0 : i64, tpu.core_type = #tpu.core_type<tc>, window_params = [{transform_indices = @transform_0, window_bounds = array<i64: 200, 8>}, {transform_indices = @transform_1, window_bounds = array<i64: 200, 8>}, {transform_indices = @transform_2, window_bounds = array<i64: 200, 8>}, {pipeline_mode = #tpu.pipeline_mode<synchronous>, transform_indices = @transform_3, window_bounds = array<i64: 8, 32>}, {pipeline_mode = #tpu.pipeline_mode<synchronous>, transform_indices = @transform_4, window_bounds = array<i64: 8, 32>}, {pipeline_mode = #tpu.pipeline_mode<synchronous>, transform_indices = @transform_5, window_bounds = array<i64: 8, 32>}, {pipeline_mode = #tpu.pipeline_mode<synchronous>, transform_indices = @transform_6, window_bounds = array<i64: 1, 32>}, {pipeline_mode = #tpu.pipeline_mode<synchronous>, transform_indices = @transform_7, window_bounds = array<i64: 32, 32>}, {pipeline_mode = #tpu.pipeline_mode<synchronous>, transform_indices = @transform_8, window_bounds = array<i64: 1, 32>}, {pipeline_mode = #tpu.pipeline_mode<synchronous>, transform_indices = @transform_9, window_bounds = array<i64: 32, 8>}, {pipeline_mode = #tpu.pipeline_mode<synchronous>, transform_indices = @transform_10, window_bounds = array<i64: 1, 8>}, {pipeline_mode = #tpu.pipeline_mode<synchronous>, transform_indices = @transform_11, window_bounds = array<i64: 1, 8>}, {pipeline_mode = #tpu.pipeline_mode<synchronous>, transform_indices = @transform_12, window_bounds = array<i64: 1, 8>}, {transform_indices = @transform_13, window_bounds = array<i64: 200, 8>}]} {
    %c0 = arith.constant 0 : index
    %c0_0 = arith.constant 0 : index
    %0 = vector.load %arg1[%c0, %c0_0] : memref<200x8xf32, #tpu.memory_space<vmem>>, vector<200x8xf32>
    %c0_1 = arith.constant 0 : index
    %c0_2 = arith.constant 0 : index
    %1 = vector.load %arg4[%c0_1, %c0_2] : memref<8x32xf32, #tpu.memory_space<vmem>>, vector<8x32xf32>
    %cst = arith.constant dense<0.000000e+00> : vector<200x32xf32>
    %2 = tpu.matmul %0, %1, %cst {dimension_numbers = #tpu.dot_dimension_numbers<[1], [0], [0], [1], [0, 0, 1, 1], [], []>} : vector<200x8xf32>, vector<8x32xf32>, vector<200x32xf32> -> vector<200x32xf32>
    %c0_3 = arith.constant 0 : index
    %c0_4 = arith.constant 0 : index
    %3 = vector.load %arg2[%c0_3, %c0_4] : memref<200x8xf32, #tpu.memory_space<vmem>>, vector<200x8xf32>
    %c0_5 = arith.constant 0 : index
    %c0_6 = arith.constant 0 : index
    %4 = vector.load %arg5[%c0_5, %c0_6] : memref<8x32xf32, #tpu.memory_space<vmem>>, vector<8x32xf32>
    %cst_7 = arith.constant dense<0.000000e+00> : vector<200x32xf32>
    %5 = tpu.matmul %3, %4, %cst_7 {dimension_numbers = #tpu.dot_dimension_numbers<[1], [0], [0], [1], [0, 0, 1, 1], [], []>} : vector<200x8xf32>, vector<8x32xf32>, vector<200x32xf32> -> vector<200x32xf32>
    %6 = arith.addf %2, %5 : vector<200x32xf32>
    %c0_8 = arith.constant 0 : index
    %c0_9 = arith.constant 0 : index
    %7 = vector.load %arg3[%c0_8, %c0_9] : memref<200x8xf32, #tpu.memory_space<vmem>>, vector<200x8xf32>
    %c0_10 = arith.constant 0 : index
    %c0_11 = arith.constant 0 : index
    %8 = vector.load %arg6[%c0_10, %c0_11] : memref<8x32xf32, #tpu.memory_space<vmem>>, vector<8x32xf32>
    %cst_12 = arith.constant dense<0.000000e+00> : vector<200x32xf32>
    %9 = tpu.matmul %7, %8, %cst_12 {dimension_numbers = #tpu.dot_dimension_numbers<[1], [0], [0], [1], [0, 0, 1, 1], [], []>} : vector<200x8xf32>, vector<8x32xf32>, vector<200x32xf32> -> vector<200x32xf32>
    %10 = arith.addf %6, %9 : vector<200x32xf32>
    %c0_13 = arith.constant 0 : index
    %c0_14 = arith.constant 0 : index
    %11 = vector.load %arg7[%c0_13, %c0_14] : memref<1x32xf32, #tpu.memory_space<vmem>>, vector<1x32xf32>
    %12 = vector.broadcast %11 : vector<1x32xf32> to vector<200x32xf32>
    %13 = arith.addf %10, %12 : vector<200x32xf32>
    %cst_15 = arith.constant 0.000000e+00 : f32
    %14 = vector.broadcast %cst_15 : f32 to vector<200x32xf32>
    %15 = arith.cmpf ogt, %13, %14 : vector<200x32xf32>
    %cst_16 = arith.constant 0.00999999977 : f32
    %16 = vector.broadcast %cst_16 : f32 to vector<200x32xf32>
    %17 = arith.mulf %16, %13 : vector<200x32xf32>
    %18 = arith.select %15, %13, %17 : vector<200x32xi1>, vector<200x32xf32>
    %c0_17 = arith.constant 0 : index
    %c0_18 = arith.constant 0 : index
    %19 = vector.load %arg8[%c0_17, %c0_18] : memref<32x32xf32, #tpu.memory_space<vmem>>, vector<32x32xf32>
    %cst_19 = arith.constant dense<0.000000e+00> : vector<200x32xf32>
    %20 = tpu.matmul %18, %19, %cst_19 {dimension_numbers = #tpu.dot_dimension_numbers<[1], [0], [0], [1], [0, 0, 1, 1], [], []>} : vector<200x32xf32>, vector<32x32xf32>, vector<200x32xf32> -> vector<200x32xf32>
    %c0_20 = arith.constant 0 : index
    %c0_21 = arith.constant 0 : index
    %21 = vector.load %arg9[%c0_20, %c0_21] : memref<1x32xf32, #tpu.memory_space<vmem>>, vector<1x32xf32>
    %22 = vector.broadcast %21 : vector<1x32xf32> to vector<200x32xf32>
    %23 = arith.addf %20, %22 : vector<200x32xf32>
    %cst_22 = arith.constant 0.000000e+00 : f32
    %24 = vector.broadcast %cst_22 : f32 to vector<200x32xf32>
    %25 = arith.cmpf ogt, %23, %24 : vector<200x32xf32>
    %cst_23 = arith.constant 0.00999999977 : f32
    %26 = vector.broadcast %cst_23 : f32 to vector<200x32xf32>
    %27 = arith.mulf %26, %23 : vector<200x32xf32>
    %28 = arith.select %25, %23, %27 : vector<200x32xi1>, vector<200x32xf32>
    %c0_24 = arith.constant 0 : index
    %c0_25 = arith.constant 0 : index
    %29 = vector.load %arg10[%c0_24, %c0_25] : memref<32x8xf32, #tpu.memory_space<vmem>>, vector<32x8xf32>
    %cst_26 = arith.constant dense<0.000000e+00> : vector<200x8xf32>
    %30 = tpu.matmul %28, %29, %cst_26 {dimension_numbers = #tpu.dot_dimension_numbers<[1], [0], [0], [1], [0, 0, 1, 1], [], []>} : vector<200x32xf32>, vector<32x8xf32>, vector<200x8xf32> -> vector<200x8xf32>
    %c0_27 = arith.constant 0 : index
    %c0_28 = arith.constant 0 : index
    %31 = vector.load %arg11[%c0_27, %c0_28] : memref<1x8xf32, #tpu.memory_space<vmem>>, vector<1x8xf32>
    %32 = vector.broadcast %31 : vector<1x8xf32> to vector<200x8xf32>
    %33 = arith.addf %30, %32 : vector<200x8xf32>
    %cst_29 = arith.constant 0.000000e+00 : f32
    %34 = vector.broadcast %cst_29 : f32 to vector<200x8xf32>
    %35 = arith.cmpf ogt, %33, %34 : vector<200x8xf32>
    %cst_30 = arith.constant 0.00999999977 : f32
    %36 = vector.broadcast %cst_30 : f32 to vector<200x8xf32>
    %37 = arith.mulf %36, %33 : vector<200x8xf32>
    %38 = arith.select %35, %33, %37 : vector<200x8xi1>, vector<200x8xf32>
    %cst_31 = arith.constant dense<0.000000e+00> : vector<200xf32>
    %39 = vector.multi_reduction <add>, %38, %cst_31 [1] : vector<200x8xf32> to vector<200xf32>
    %40 = vector.shape_cast %39 : vector<200xf32> to vector<200x1xf32>
    %cst_32 = arith.constant 8.000000e+00 : f32
    %41 = vector.broadcast %cst_32 : f32 to vector<200x1xf32>
    %42 = arith.divf %40, %41 : vector<200x1xf32>
    %43 = vector.broadcast %42 : vector<200x1xf32> to vector<200x8xf32>
    %44 = arith.subf %38, %43 : vector<200x8xf32>
    %45 = arith.mulf %44, %44 : vector<200x8xf32>
    %cst_33 = arith.constant dense<0.000000e+00> : vector<200xf32>
    %46 = vector.multi_reduction <add>, %45, %cst_33 [1] : vector<200x8xf32> to vector<200xf32>
    %47 = vector.shape_cast %46 : vector<200xf32> to vector<200x1xf32>
    %cst_34 = arith.constant 8.000000e+00 : f32
    %48 = vector.broadcast %cst_34 : f32 to vector<200x1xf32>
    %49 = arith.divf %47, %48 : vector<200x1xf32>
    %cst_35 = arith.constant 9.99999974E-6 : f32
    %50 = vector.broadcast %cst_35 : f32 to vector<200x1xf32>
    %51 = arith.addf %49, %50 : vector<200x1xf32>
    %52 = math.rsqrt %51 : vector<200x1xf32>
    %53 = vector.broadcast %52 : vector<200x1xf32> to vector<200x8xf32>
    %54 = arith.mulf %44, %53 : vector<200x8xf32>
    %c0_36 = arith.constant 0 : index
    %c0_37 = arith.constant 0 : index
    %55 = vector.load %arg12[%c0_36, %c0_37] : memref<1x8xf32, #tpu.memory_space<vmem>>, vector<1x8xf32>
    %56 = vector.broadcast %55 : vector<1x8xf32> to vector<200x8xf32>
    %57 = arith.mulf %54, %56 : vector<200x8xf32>
    %c0_38 = arith.constant 0 : index
    %c0_39 = arith.constant 0 : index
    %58 = vector.load %arg13[%c0_38, %c0_39] : memref<1x8xf32, #tpu.memory_space<vmem>>, vector<1x8xf32>
    %59 = vector.broadcast %58 : vector<1x8xf32> to vector<200x8xf32>
    %60 = arith.addf %57, %59 : vector<200x8xf32>
    %c0_40 = arith.constant 0 : index
    %c0_41 = arith.constant 0 : index
    %61 = vector.load %arg14[%c0_40, %c0_41] : memref<200x8xf32, #tpu.memory_space<vmem>>, vector<200x8xf32>
    tpu.vector_store %arg14[%c0_40, %c0_41], %60 {strides = array<i32>} : memref<200x8xf32, #tpu.memory_space<vmem>>, vector<200x8xf32>,
    return
  }
  func.func @transform_0(%arg0: i32) -> (i32, i32) {
    %c0_i32 = arith.constant 0 : i32
    %c0_i32_0 = arith.constant 0 : i32
    return %arg0, %c0_i32 : i32, i32
  }
  func.func @transform_1(%arg0: i32) -> (i32, i32) {
    %c0_i32 = arith.constant 0 : i32
    %c0_i32_0 = arith.constant 0 : i32
    return %arg0, %c0_i32 : i32, i32
  }
  func.func @transform_2(%arg0: i32) -> (i32, i32) {
    %c0_i32 = arith.constant 0 : i32
    %c0_i32_0 = arith.constant 0 : i32
    return %arg0, %c0_i32 : i32, i32
  }
  func.func @transform_3(%arg0: i32) -> (i32, i32) {
    %c0_i32 = arith.constant 0 : i32
    %c0_i32_0 = arith.constant 0 : i32
    %c0_i32_1 = arith.constant 0 : i32
    return %c0_i32, %c0_i32_0 : i32, i32
  }
  func.func @transform_4(%arg0: i32) -> (i32, i32) {
    %c0_i32 = arith.constant 0 : i32
    %c0_i32_0 = arith.constant 0 : i32
    %c0_i32_1 = arith.constant 0 : i32
    return %c0_i32, %c0_i32_0 : i32, i32
  }
  func.func @transform_5(%arg0: i32) -> (i32, i32) {
    %c0_i32 = arith.constant 0 : i32
    %c0_i32_0 = arith.constant 0 : i32
    %c0_i32_1 = arith.constant 0 : i32
    return %c0_i32, %c0_i32_0 : i32, i32
  }
  func.func @transform_6(%arg0: i32) -> (i32, i32) {
    %c0_i32 = arith.constant 0 : i32
    %c0_i32_0 = arith.constant 0 : i32
    %c0_i32_1 = arith.constant 0 : i32
    return %c0_i32, %c0_i32_0 : i32, i32
  }
  func.func @transform_7(%arg0: i32) -> (i32, i32) {
    %c0_i32 = arith.constant 0 : i32
    %c0_i32_0 = arith.constant 0 : i32
    %c0_i32_1 = arith.constant 0 : i32
    return %c0_i32, %c0_i32_0 : i32, i32
  }
  func.func @transform_8(%arg0: i32) -> (i32, i32) {
    %c0_i32 = arith.constant 0 : i32
    %c0_i32_0 = arith.constant 0 : i32
    %c0_i32_1 = arith.constant 0 : i32
    return %c0_i32, %c0_i32_0 : i32, i32
  }
  func.func @transform_9(%arg0: i32) -> (i32, i32) {
    %c0_i32 = arith.constant 0 : i32
    %c0_i32_0 = arith.constant 0 : i32
    %c0_i32_1 = arith.constant 0 : i32
    return %c0_i32, %c0_i32_0 : i32, i32
  }
  func.func @transform_10(%arg0: i32) -> (i32, i32) {
    %c0_i32 = arith.constant 0 : i32
    %c0_i32_0 = arith.constant 0 : i32
    %c0_i32_1 = arith.constant 0 : i32
    return %c0_i32, %c0_i32_0 : i32, i32
  }
  func.func @transform_11(%arg0: i32) -> (i32, i32) {
    %c0_i32 = arith.constant 0 : i32
    %c0_i32_0 = arith.constant 0 : i32
    %c0_i32_1 = arith.constant 0 : i32
    return %c0_i32, %c0_i32_0 : i32, i32
  }
  func.func @transform_12(%arg0: i32) -> (i32, i32) {
    %c0_i32 = arith.constant 0 : i32
    %c0_i32_0 = arith.constant 0 : i32
    %c0_i32_1 = arith.constant 0 : i32
    return %c0_i32, %c0_i32_0 : i32, i32
  }
  func.func @transform_13(%arg0: i32) -> (i32, i32) {
    %c0_i32 = arith.constant 0 : i32
    %c0_i32_0 = arith.constant 0 : i32
    return %arg0, %c0_i32 : i32, i32
  }
}

</mosaic_0001>

<bundles_post_ra>
// kernel: tpu_custom_call.1
= control target key start
LH: loop header
LB: loop body
LE: loop exit
PB: predicated region body
PF: predicated region fallthrough
CT: control target
= control target key end

     0   :  { %vm96_vm0 = vcmask 64512   ;;  %vm761_vm2 = vcmask 261120   ;;  %s3169_s4 = inlined_call_operand.vmem [shape: f32[8,32], index: 4, kind: input, shape index: {}]   ;;  %s3170_s1 = inlined_call_operand.vmem [shape: f32[200,8], index: 1, kind: input, shape index: {}]   ;;  %s3171_s5 = inlined_call_operand.vmem [shape: f32[8,32], index: 5, kind: input, shape index: {}]   ;;  %s3172_s3 = inlined_call_operand.vmem [shape: f32[8,32], index: 3, kind: input, shape index: {}]   ;;  %s3173_s0 = inlined_call_operand.vmem [shape: f32[200,8], index: 0, kind: input, shape index: {}]   ;;  %s3174_s2 = inlined_call_operand.vmem [shape: f32[200,8], index: 2, kind: input, shape index: {}]   ;;  %s3175_s6 = inlined_call_operand.vmem [shape: f32[1,32], index: 6, kind: input, shape index: {}]   ;;  %s3176_s7 = inlined_call_operand.vmem [shape: f32[32,32], index: 7, kind: input, shape index: {}]   ;;  %s3177_s8 = inlined_call_operand.vmem [shape: f32[1,32], index: 8, kind: input, shape index: {}]   ;;  %s3178_s9 = inlined_call_operand.vmem [shape: f32[32,8], index: 9, kind: input, shape index: {}]   ;;  %s3179_s10 = inlined_call_operand.vmem [shape: f32[1,8], index: 10, kind: input, shape index: {}]   ;;  %s3180_s11 = inlined_call_operand.vmem [shape: f32[1,8], index: 11, kind: input, shape index: {}]   ;;  %s3181_s12 = inlined_call_operand.vmem [shape: f32[1,8], index: 12, kind: input, shape index: {}]   ;;  %s3182_s13 = inlined_call_operand.vmem [shape: f32[200,8], index: 13, kind: output, shape index: {}]  }
   0x1   :  { %v95_v0 = vld [vmem:[%s3169_s4] sm:$0xff]  ;;  %v77_v1 = vld [vmem:[%s3170_s1 + $0x38] sm:$0xff]  ;;  %v84_v2 = vld [vmem:[%s3170_s1 + $0x70] sm:$0xff] }
   0x2   :  { %2023 = vmatpush.msra.mxu1 %v95_v0  ;;  %2024 = vmatpush.msra.mxu2 %v95_v0  ;;  %v456_v3 = vld [vmem:[%s3171_s5] sm:$0xff]  ;;  %v85_v6 = vld [vmem:[%s3170_s1 + $0x78] sm:$0xff]  ;;  %v79_v7 = vld [vmem:[%s3170_s1 + $0x48] sm:$0xff] }
   0x3   :  { %v69_v4 = vld [vmem:[%s3172_s3] sm:$0xff]  ;;  %1905 = vmatmul.msk.f32.vlgmr.msra.gmra.mxu1 %vm96_vm0, %v77_v1  ;;  %1912 = vmatmul.msk.f32.vlgmr.msra.gmra.mxu2 %vm96_vm0, %v84_v2  ;;  %v80_v9 = vld [vmem:[%s3170_s1 + $0x50] sm:$0xff]  ;;  %v87_v10 = vld [vmem:[%s3170_s1 + $0x88] sm:$0xff] }
   0x4   :  { %547 = vmatpush.msrb.mxu2 %v456_v3  ;;  %354 = vmatpush.msrb.mxu1 %v69_v4  ;;  %v78_v5 = vld [vmem:[%s3170_s1 + $0x40] sm:$0xff]  ;;  %v81_v12 = vld [vmem:[%s3170_s1 + $0x58] sm:$0xff]  ;;  %v88_v13 = vld [vmem:[%s3170_s1 + $0x90] sm:$0xff] }
   0x5   :  { %187 = vmatpush.msra.mxu0 %v95_v0  ;;  %2025 = vmatpush.msra.mxu3 %v95_v0  ;;  %v86_v8 = vld [vmem:[%s3170_s1 + $0x80] sm:$0xff]  ;;  %v71_v14 = vld [vmem:[%s3170_s1 + $0x8] sm:$0xff]  ;;  %v89_v16 = vld [vmem:[%s3170_s1 + $0x98] sm:$0xff] }
   0x6   :  { %v70_v11 = vld [vmem:[%s3170_s1] sm:$0xff]  ;;  %v72_v17 = vld [vmem:[%s3170_s1 + $0x10] sm:$0xff]  ;;  %v83_v18 = vld [vmem:[%s3170_s1 + $0x68] sm:$0xff] }
   0x7   :  { %1898 = vmatmul.msk.f32.vlgmr.msra.gmra.mxu0 %vm96_vm0, %v70_v11  ;;  %v82_v15 = vld [vmem:[%s3170_s1 + $0x60] sm:$0xff]  ;;  %v73_v20 = vld [vmem:[%s3170_s1 + $0x18] sm:$0xff]  ;;  %v45_v24 = vld [vmem:[%s3173_s0 + $0x8] sm:$0xff] }
   0x8   :  { %v90_v19 = vld [vmem:[%s3170_s1 + $0xa0] sm:$0xff]  ;;  %v432_v25 = vld [vmem:[%s3174_s2 + $0x8] sm:$0xff]  ;;  %v46_v27 = vld [vmem:[%s3173_s0 + $0x10] sm:$0xff] }
   0x9   :  { %v44_v21 = vld [vmem:[%s3173_s0] sm:$0xff]  ;;  %v75_v26 = vld [vmem:[%s3170_s1 + $0x28] sm:$0xff]  ;;  %v433_v28 = vld [vmem:[%s3174_s2 + $0x10] sm:$0xff] }
   0xa   :  { %v431_v22 = vld [vmem:[%s3174_s2] sm:$0xff]  ;;  %v76_v29 = vld [vmem:[%s3170_s1 + $0x30] sm:$0xff]  ;;  %v47_v30 = vld [vmem:[%s3173_s0 + $0x18] sm:$0xff] }
   0xb   :  { %1906 = vmatmul.msk.f32.gmra.mxu1 %vm96_vm0, %v78_v5  ;;  %1913 = vmatmul.msk.f32.gmra.mxu2 %vm96_vm0, %v85_v6  ;;  %v74_v23 = vld [vmem:[%s3170_s1 + $0x20] sm:$0xff]  ;;  %v434_v31 = vld [vmem:[%s3174_s2 + $0x18] sm:$0xff]  ;;  %v49_v34 = vld [vmem:[%s3173_s0 + $0x28] sm:$0xff] }
   0xc   :  { %v48_v32 = vld [vmem:[%s3173_s0 + $0x20] sm:$0xff]  ;;  %v436_v35 = vld [vmem:[%s3174_s2 + $0x28] sm:$0xff]  ;;  %v50_v36 = vld [vmem:[%s3173_s0 + $0x30] sm:$0xff] }
   0xd   :  { %v435_v33 = vld [vmem:[%s3174_s2 + $0x20] sm:$0xff]  ;;  %v437_v37 = vld [vmem:[%s3174_s2 + $0x30] sm:$0xff]  ;;  %v51_v38 = vld [vmem:[%s3173_s0 + $0x38] sm:$0xff] }
   0xe   :  { %v438_v39 = vld [vmem:[%s3174_s2 + $0x38] sm:$0xff]  ;;  %v52_v40 = vld [vmem:[%s3173_s0 + $0x40] sm:$0xff]  ;;  %v53_v43 = vld [vmem:[%s3173_s0 + $0x48] sm:$0xff] }
   0xf   :  { %1899 = vmatmul.msk.f32.gmra.mxu0 %vm96_vm0, %v71_v14  ;;  %v439_v41 = vld [vmem:[%s3174_s2 + $0x40] sm:$0xff]  ;;  %v440_v44 = vld [vmem:[%s3174_s2 + $0x48] sm:$0xff]  ;;  %v756_v47 = vld [vmem:[%s3176_s7 + $0x18] sm:$0xff] }
  0x10   :  { %v91_v45 = vld [vmem:[%s3170_s1 + $0xa8] sm:$0xff]  ;;  %849 = vmatpush.msrb.mxu3 %v756_v47  ;;  %v54_v49 = vld [vmem:[%s3173_s0 + $0x50] sm:$0xff]  ;;  %v55_v55 = vld [vmem:[%s3173_s0 + $0x58] sm:$0xff] }
  0x11   :  { %1919 = vmatmul.msk.f32.vlgmr.msra.gmra.mxu3 %vm96_vm0, %v91_v45  ;;  %v441_v50 = vld [vmem:[%s3174_s2 + $0x50] sm:$0xff]  ;;  %v442_v56 = vld [vmem:[%s3174_s2 + $0x58] sm:$0xff]  ;;  %v754_v59 = vld [vmem:[%s3176_s7 + $0x8] sm:$0xff] }
  0x12   :  { %v92_v51 = vld [vmem:[%s3170_s1 + $0xb0] sm:$0xff]  ;;  %v93_v57 = vld [vmem:[%s3170_s1 + $0xb8] sm:$0xff]  ;;  %v56_v61 = vld [vmem:[%s3173_s0 + $0x60] sm:$0xff] }
  0x13   :  { %1907 = vmatmul.msk.f32.gmra.mxu1 %vm96_vm0, %v79_v7  ;;  %1914 = vmatmul.msk.f32.gmra.mxu2 %vm96_vm0, %v86_v8  ;;  %v755_v53 = vld [vmem:[%s3176_s7 + $0x10] sm:$0xff]  ;;  %v443_v62 = vld [vmem:[%s3174_s2 + $0x60] sm:$0xff]  ;;  %v57_v2 = vld [vmem:[%s3173_s0 + $0x68] sm:$0xff] }
  0x14   :  { %850 = vmatpush.msrb.mxu3 %v755_v53  ;;  %v94_v63 = vld [vmem:[%s3170_s1 + $0xc0] sm:$0xff]  ;;  %v444_v3 = vld [vmem:[%s3174_s2 + $0x68] sm:$0xff]  ;;  %v58_v7 = vld [vmem:[%s3173_s0 + $0x70] sm:$0xff] }
  0x15   :  { %v753_v4 = vld [vmem:[%s3176_s7] sm:$0xff]  ;;  %v445_v8 = vld [vmem:[%s3174_s2 + $0x70] sm:$0xff]  ;;  %v63_v45 = vld [vmem:[%s3173_s0 + $0x98] sm:$0xff] }
  0x16   :  { %851 = vmatpush.msrb.mxu3 %v754_v59  ;;  %v450_v47 = vld [vmem:[%s3174_s2 + $0x98] sm:$0xff] }
  0x17   :  { %1900 = vmatmul.msk.f32.gmra.mxu0 %vm96_vm0, %v72_v17  ;;  %v60_v17 = vld [vmem:[%s3173_s0 + $0x80] sm:$0xff] }
  0x18   :  { %852 = vmatpush.msrb.mxu3 %v753_v4 }
  0x19   :  { %1920 = vmatmul.msk.f32.gmra.mxu3 %vm96_vm0, %v92_v51 }
  0x1b   :  { %1908 = vmatmul.msk.f32.gmra.mxu1 %vm96_vm0, %v80_v9  ;;  %1915 = vmatmul.msk.f32.gmra.mxu2 %vm96_vm0, %v87_v10 }
  0x1f   :  { %1901 = vmatmul.msk.f32.gmra.mxu0 %vm96_vm0, %v73_v20  ;;  %v2443_v20 = vld [vmem:[%s3175_s6] ss:$0 sm:$0xff] }
  0x21   :  { %1921 = vmatmul.msk.f32.gmra.mxu3 %vm96_vm0, %v93_v57 }
  0x23   :  { %1909 = vmatmul.msk.f32.gmra.mxu1 %vm96_vm0, %v81_v12  ;;  %1916 = vmatmul.msk.f32.gmra.mxu2 %vm96_vm0, %v88_v13  ;;  %v59_v12 = vld [vmem:[%s3173_s0 + $0x78] sm:$0xff] }
  0x24   :  { %v446_v13 = vld [vmem:[%s3174_s2 + $0x78] sm:$0xff] }
  0x27   :  { %1902 = vmatmul.msk.f32.gmra.mxu0 %vm96_vm0, %v74_v23 }
  0x29   :  { %1922 = vmatmul.msk.f32.gmra.mxu3 %vm96_vm0, %v94_v63 }
  0x2b   :  { %1910 = vmatmul.msk.f32.gmra.mxu1 %vm96_vm0, %v82_v15  ;;  %1917 = vmatmul.msk.f32.gmra.mxu2 %vm96_vm0, %v89_v16 }
  0x2f   :  { %1903 = vmatmul.msk.f32.gmra.mxu0 %vm96_vm0, %v75_v26 }
  0x33   :  { %1911 = vmatmul.msk.f32.gmra.mxu1 %vm96_vm0, %v83_v18  ;;  %1918 = vmatmul.msk.f32.gmra.mxu2 %vm96_vm0, %v90_v19  ;;  %v447_v18 = vld [vmem:[%s3174_s2 + $0x80] sm:$0xff] }
  0x37   :  { %1904 = vmatmul.msk.f32.gmra.mxu0 %vm96_vm0, %v76_v29 }
  0x3b   :  { %1923 = vmatmul.msk.f32.vlgmr.msrb.gmra.mxu1 %vm96_vm0, %v44_v21  ;;  %1948 = vmatmul.msk.f32.vlgmr.msrb.gmra.mxu2 %vm96_vm0, %v431_v22 }
  0x43   :  { %1924 = vmatmul.msk.f32.gmra.mxu1 %vm96_vm0, %v45_v24  ;;  %1949 = vmatmul.msk.f32.gmra.mxu2 %vm96_vm0, %v432_v25  ;;  %v61_v24 = vld [vmem:[%s3173_s0 + $0x88] sm:$0xff] }
  0x44   :  { %v448_v25 = vld [vmem:[%s3174_s2 + $0x88] sm:$0xff] }
  0x4b   :  { %1925 = vmatmul.msk.f32.gmra.mxu1 %vm96_vm0, %v46_v27  ;;  %1950 = vmatmul.msk.f32.gmra.mxu2 %vm96_vm0, %v433_v28 }
  0x53   :  { %1926 = vmatmul.msk.f32.gmra.mxu1 %vm96_vm0, %v47_v30  ;;  %1951 = vmatmul.msk.f32.gmra.mxu2 %vm96_vm0, %v434_v31 }
  0x5b   :  { %1927 = vmatmul.msk.f32.gmra.mxu1 %vm96_vm0, %v48_v32  ;;  %1952 = vmatmul.msk.f32.gmra.mxu2 %vm96_vm0, %v435_v33 }
  0x63   :  { %1928 = vmatmul.msk.f32.gmra.mxu1 %vm96_vm0, %v49_v34  ;;  %1953 = vmatmul.msk.f32.gmra.mxu2 %vm96_vm0, %v436_v35  ;;  %v62_v34 = vld [vmem:[%s3173_s0 + $0x90] sm:$0xff] }
  0x64   :  { %v449_v35 = vld [vmem:[%s3174_s2 + $0x90] sm:$0xff] }
  0x6b   :  { %1929 = vmatmul.msk.f32.gmra.mxu1 %vm96_vm0, %v50_v36  ;;  %1954 = vmatmul.msk.f32.gmra.mxu2 %vm96_vm0, %v437_v37 }
  0x73   :  { %1930 = vmatmul.msk.f32.gmra.mxu1 %vm96_vm0, %v51_v38  ;;  %1955 = vmatmul.msk.f32.gmra.mxu2 %vm96_vm0, %v438_v39 }
  0x7b   :  { %1931 = vmatmul.msk.f32.gmra.mxu1 %vm96_vm0, %v52_v40  ;;  %1956 = vmatmul.msk.f32.gmra.mxu2 %vm96_vm0, %v439_v41 }
  0x80   :  { %v2320_v42 = vpop.f32.mrf.mxu1 }
  0x83   :  { %1932 = vmatmul.msk.f32.gmra.mxu1 %vm96_vm0, %v53_v43  ;;  %1957 = vmatmul.msk.f32.gmra.mxu2 %vm96_vm0, %v440_v44 }
  0x84   :  { %v189_v9 = vpop.f32.mrf.mxu0 }
  0x86   :  { %v2333_v46 = vpop.f32.mrf.mxu2 }
  0x88   :  { %v2339_v48 = vpop.f32.mrf.mxu1 }
  0x8b   :  { %1933 = vmatmul.msk.f32.gmra.mxu1 %vm96_vm0, %v54_v49  ;;  %1958 = vmatmul.msk.f32.gmra.mxu2 %vm96_vm0, %v441_v50 }
  0x8c   :  { %v192_v15 = vpop.f32.mrf.mxu0 }
  0x8e   :  { %v2352_v52 = vpop.f32.mrf.mxu2 }
  0x90   :  { %v2358_v54 = vpop.f32.mrf.mxu1 }
  0x93   :  { %1934 = vmatmul.msk.f32.gmra.mxu1 %vm96_vm0, %v55_v55  ;;  %1959 = vmatmul.msk.f32.gmra.mxu2 %vm96_vm0, %v442_v56 }
  0x94   :  { %v195_v26 = vpop.f32.mrf.mxu0 }
  0x96   :  { %v2371_v58 = vpop.f32.mrf.mxu2 }
  0x98   :  { %v2377_v60 = vpop.f32.mrf.mxu1 }
  0x9b   :  { %1935 = vmatmul.msk.f32.gmra.mxu1 %vm96_vm0, %v56_v61  ;;  %1960 = vmatmul.msk.f32.gmra.mxu2 %vm96_vm0, %v443_v62  ;;  %v64_v61 = vld [vmem:[%s3173_s0 + $0xa0] sm:$0xff] }
  0x9c   :  { %v198_v37 = vpop.f32.mrf.mxu0  ;;  %v451_v62 = vld [vmem:[%s3174_s2 + $0xa0] sm:$0xff] }
  0x9e   :  { %v2390_v0 = vpop.f32.mrf.mxu2 }
  0xa0   :  { %v2393_v1 = vpop.f32.mrf.mxu1 }
  0xa3   :  { %1936 = vmatmul.msk.f32.gmra.mxu1 %vm96_vm0, %v57_v2  ;;  %1961 = vmatmul.msk.f32.gmra.mxu2 %vm96_vm0, %v444_v3 }
  0xa4   :  { %v201_v53 = vpop.f32.mrf.mxu0 }
  0xa6   :  { %v2406_v5 = vpop.f32.mrf.mxu2 }
  0xa8   :  { %v2408_v6 = vpop.f32.mrf.mxu1 }
  0xab   :  { %1937 = vmatmul.msk.f32.gmra.mxu1 %vm96_vm0, %v58_v7  ;;  %1962 = vmatmul.msk.f32.gmra.mxu2 %vm96_vm0, %v445_v8 }
  0xac   :  { %v204_v8 = vpop.f32.mrf.mxu0 }
  0xae   :  { %v2418_v10 = vpop.f32.mrf.mxu2 }
  0xb0   :  { %v2420_v11 = vpop.f32.mrf.mxu1 }
  0xb3   :  { %1938 = vmatmul.msk.f32.gmra.mxu1 %vm96_vm0, %v59_v12  ;;  %1963 = vmatmul.msk.f32.gmra.mxu2 %vm96_vm0, %v446_v13  ;;  %v65_v13 = vld [vmem:[%s3173_s0 + $0xa8] sm:$0xff] }
  0xb6   :  { %v2430_v14 = vpop.f32.mrf.mxu2 }
  0xb8   :  { %v356_v16 = vpop.f32.mrf.mxu1 }
  0xb9   :  { %v357_v19 = vadd.f32 %v356_v16, %v189_v9 }
  0xbb   :  { %1939 = vmatmul.msk.f32.gmra.mxu1 %vm96_vm0, %v60_v17  ;;  %1964 = vmatmul.msk.f32.gmra.mxu2 %vm96_vm0, %v447_v18 }
  0xbe   :  { %v549_v21 = vpop.f32.mrf.mxu2 }
  0xbf   :  { %v624_v22 = vadd.f32 %v549_v21, %v357_v19 }
  0xc0   :  { %v359_v23 = vpop.f32.mrf.mxu1 }
  0xc1   :  { %v653_v27 = vadd.f32 %v2443_v20, %v624_v22  ;;  %v360_v28 = vadd.f32 %v359_v23, %v192_v15  ;;  %v452_v15 = vld [vmem:[%s3174_s2 + $0xa8] sm:$0xff] }
  0xc3   :  { %1940 = vmatmul.msk.f32.gmra.mxu1 %vm96_vm0, %v61_v24  ;;  %1965 = vmatmul.msk.f32.gmra.mxu2 %vm96_vm0, %v448_v25  ;;  %vm678_vm1 = vcmp.gt.f32.partialorder %v653_v27, 0.0  ;;  %v703_v29 = vmul.f32 0.01, %v653_v27  ;;  %v66_v24 = vld [vmem:[%s3173_s0 + $0xb0] sm:$0xff] }
  0xc4   :  { %v453_v25 = vld [vmem:[%s3174_s2 + $0xb0] sm:$0xff] }
  0xc5   :  { %v728_v30 = vsel %vm678_vm1, %v653_v27, %v703_v29 }
  0xc6   :  { %v552_v31 = vpop.f32.mrf.mxu2  ;;  %1973 = vmatmul.msk.f32.vlgmr.msrb.gmra.mxu3 %vm761_vm2, %v728_v30 }
  0xc7   :  { %v625_v32 = vadd.f32 %v552_v31, %v360_v28 }
  0xc8   :  { %v362_v33 = vpop.f32.mrf.mxu1 }
  0xc9   :  { %v654_v36 = vadd.f32 %v2443_v20, %v625_v32  ;;  %v363_v38 = vadd.f32 %v362_v33, %v195_v26  ;;  %v207_v26 = vpop.f32.mrf.mxu0 }
  0xcb   :  { %1941 = vmatmul.msk.f32.gmra.mxu1 %vm96_vm0, %v62_v34  ;;  %1966 = vmatmul.msk.f32.gmra.mxu2 %vm96_vm0, %v449_v35  ;;  %vm679_vm3 = vcmp.gt.f32.partialorder %v654_v36, 0.0  ;;  %v704_v39 = vmul.f32 0.01, %v654_v36  ;;  %v67_v34 = vld [vmem:[%s3173_s0 + $0xb8] sm:$0xff] }
  0xcc   :  { %v454_v35 = vld [vmem:[%s3174_s2 + $0xb8] sm:$0xff] }
  0xcd   :  { %v729_v40 = vsel %vm679_vm3, %v654_v36, %v704_v39 }
  0xce   :  { %v555_v41 = vpop.f32.mrf.mxu2  ;;  %1974 = vmatmul.msk.f32.gmra.mxu3 %vm761_vm2, %v729_v40 }
  0xcf   :  { %v626_v43 = vadd.f32 %v555_v41, %v363_v38 }
  0xd0   :  { %v365_v44 = vpop.f32.mrf.mxu1 }
  0xd1   :  { %v655_v49 = vadd.f32 %v2443_v20, %v626_v43  ;;  %v366_v50 = vadd.f32 %v365_v44, %v198_v37  ;;  %v68_v44 = vld [vmem:[%s3173_s0 + $0xc0] sm:$0xff] }
  0xd3   :  { %1942 = vmatmul.msk.f32.gmra.mxu1 %vm96_vm0, %v63_v45  ;;  %1967 = vmatmul.msk.f32.gmra.mxu2 %vm96_vm0, %v450_v47  ;;  %vm680_vm4 = vcmp.gt.f32.partialorder %v655_v49, 0.0  ;;  %v705_v51 = vmul.f32 0.01, %v655_v49  ;;  %v455_v45 = vld [vmem:[%s3174_s2 + $0xc0] sm:$0xff] }
  0xd5   :  { %v730_v55 = vsel %vm680_vm4, %v655_v49, %v705_v51 }
  0xd6   :  { %v558_v56 = vpop.f32.mrf.mxu2  ;;  %1975 = vmatmul.msk.f32.gmra.mxu3 %vm761_vm2, %v730_v55 }
  0xd7   :  { %v627_v57 = vadd.f32 %v558_v56, %v366_v50 }
  0xd8   :  { %v368_v59 = vpop.f32.mrf.mxu1 }
  0xd9   :  { %v656_v63 = vadd.f32 %v2443_v20, %v627_v57  ;;  %v369_v2 = vadd.f32 %v368_v59, %v201_v53  ;;  %v1006_v59 = vld [vmem:[%s3178_s9 + $0x10] sm:$0xff] }
  0xdb   :  { %1943 = vmatmul.msk.f32.gmra.mxu1 %vm96_vm0, %v64_v61  ;;  %1968 = vmatmul.msk.f32.gmra.mxu2 %vm96_vm0, %v451_v62  ;;  %vm681_vm5 = vcmp.gt.f32.partialorder %v656_v63, 0.0  ;;  %v706_v3 = vmul.f32 0.01, %v656_v63 }
  0xdd   :  { %v731_v4 = vsel %vm681_vm5, %v656_v63, %v706_v3 }
  0xde   :  { %v561_v7 = vpop.f32.mrf.mxu2  ;;  %1976 = vmatmul.msk.f32.gmra.mxu3 %vm761_vm2, %v731_v4 }
  0xdf   :  { %v628_v9 = vadd.f32 %v561_v7, %v369_v2 }
  0xe0   :  { %v371_v12 = vpop.f32.mrf.mxu1 }
  0xe1   :  { %v657_v16 = vadd.f32 %v2443_v20, %v628_v9  ;;  %v372_v17 = vadd.f32 %v371_v12, %v204_v8 }
  0xe3   :  { %1944 = vmatmul.msk.f32.gmra.mxu1 %vm96_vm0, %v65_v13  ;;  %1969 = vmatmul.msk.f32.gmra.mxu2 %vm96_vm0, %v452_v15  ;;  %vm682_vm6 = vcmp.gt.f32.partialorder %v657_v16, 0.0  ;;  %v707_v18 = vmul.f32 0.01, %v657_v16 }
  0xe5   :  { %v732_v19 = vsel %vm682_vm6, %v657_v16, %v707_v18  ;;  %v1005_v16 = vld [vmem:[%s3178_s9 + $0x8] sm:$0xff] }
  0xe6   :  { %v564_v21 = vpop.f32.mrf.mxu2  ;;  %1977 = vmatmul.msk.f32.gmra.mxu3 %vm761_vm2, %v732_v19 }
  0xe7   :  { %v629_v22 = vadd.f32 %v564_v21, %v372_v17 }
  0xe8   :  { %v374_v23 = vpop.f32.mrf.mxu1 }
  0xe9   :  { %v658_v27 = vadd.f32 %v2443_v20, %v629_v22  ;;  %v375_v28 = vadd.f32 %v374_v23, %v207_v26 }
  0xeb   :  { %1945 = vmatmul.msk.f32.gmra.mxu1 %vm96_vm0, %v66_v24  ;;  %1970 = vmatmul.msk.f32.gmra.mxu2 %vm96_vm0, %v453_v25  ;;  %vm683_vm7 = vcmp.gt.f32.partialorder %v658_v27, 0.0  ;;  %v708_v29 = vmul.f32 0.01, %v658_v27 }
  0xed   :  { %v733_v30 = vsel %vm683_vm7, %v658_v27, %v708_v29 }
  0xee   :  { %v567_v31 = vpop.f32.mrf.mxu2  ;;  %1978 = vmatmul.msk.f32.gmra.mxu3 %vm761_vm2, %v733_v30  ;;  %v2549_v30 = vpop.f32.mrf.mxu3 }
  0xef   :  { %v630_v32 = vadd.f32 %v567_v31, %v375_v28  ;;  %v1004_v31 = vld [vmem:[%s3178_s9] sm:$0xff] }
  0xf0   :  { %v377_v33 = vpop.f32.mrf.mxu1 }
  0xf1   :  { %v659_v36 = vadd.f32 %v2443_v20, %v630_v32  ;;  %v378_v38 = vadd.f32 %v377_v33, %v2320_v42  ;;  %v1007_v42 = vld [vmem:[%s3178_s9 + $0x18] sm:$0xff] }
  0xf2   :  { %1099 = vmatpush.msrb.mxu0 %v1007_v42 }
  0xf3   :  { %1946 = vmatmul.msk.f32.gmra.mxu1 %vm96_vm0, %v67_v34  ;;  %1971 = vmatmul.msk.f32.gmra.mxu2 %vm96_vm0, %v454_v35  ;;  %vm684_vm8 = vcmp.gt.f32.partialorder %v659_v36, 0.0  ;;  %v709_v37 = vmul.f32 0.01, %v659_v36 }
  0xf4   :  { %1100 = vmatpush.msrb.mxu0 %v1006_v59 }
  0xf5   :  { %v734_v39 = vsel %vm684_vm8, %v659_v36, %v709_v37 }
  0xf6   :  { %v570_v40 = vpop.f32.mrf.mxu2  ;;  %1979 = vmatmul.msk.f32.gmra.mxu3 %vm761_vm2, %v734_v39  ;;  %1101 = vmatpush.msrb.mxu0 %v1005_v16  ;;  %v2557_v39 = vpop.f32.mrf.mxu3 }
  0xf7   :  { %v631_v41 = vadd.f32 %v570_v40, %v378_v38 }
  0xf8   :  { %v380_v43 = vpop.f32.mrf.mxu1  ;;  %1102 = vmatpush.msrb.mxu0 %v1004_v31 }
  0xf9   :  { %v660_v47 = vadd.f32 %v2443_v20, %v631_v41  ;;  %v381_v50 = vadd.f32 %v380_v43, %v2339_v48 }
  0xfb   :  { %1947 = vmatmul.msk.f32.gmra.mxu1 %vm96_vm0, %v68_v44  ;;  %1972 = vmatmul.msk.f32.gmra.mxu2 %vm96_vm0, %v455_v45  ;;  %vm685_vm9 = vcmp.gt.f32.partialorder %v660_v47, 0.0  ;;  %v710_v49 = vmul.f32 0.01, %v660_v47 }
  0xfd   :  { %v735_v51 = vsel %vm685_vm9, %v660_v47, %v710_v49 }
  0xfe   :  { %v573_v53 = vpop.f32.mrf.mxu2  ;;  %1980 = vmatmul.msk.f32.gmra.mxu3 %vm761_vm2, %v735_v51 }
  0xff   :  { %v632_v55 = vadd.f32 %v573_v53, %v381_v50  ;;  %v2563_v50 = vpop.f32.mrf.mxu3 }
 0x100   :  { %v383_v56 = vpop.f32.mrf.mxu1 }
 0x101   :  { %v661_v57 = vadd.f32 %v2443_v20, %v632_v55  ;;  %v384_v62 = vadd.f32 %v383_v56, %v2358_v54 }
 0x103   :  { %vm686_vm10 = vcmp.gt.f32.partialorder %v661_v57, 0.0  ;;  %v711_v61 = vmul.f32 0.01, %v661_v57 }
 0x105   :  { %v736_v63 = vsel %vm686_vm10, %v661_v57, %v711_v61 }
 0x106   :  { %v576_v2 = vpop.f32.mrf.mxu2  ;;  %1981 = vmatmul.msk.f32.gmra.mxu3 %vm761_vm2, %v736_v63 }
 0x107   :  { %v633_v48 = vadd.f32 %v576_v2, %v384_v62 }
 0x108   :  { %v386_v3 = vpop.f32.mrf.mxu1 }
 0x109   :  { %v662_v4 = vadd.f32 %v2443_v20, %v633_v48  ;;  %v387_v8 = vadd.f32 %v386_v3, %v2377_v60 }
 0x10b   :  { %vm687_vm11 = vcmp.gt.f32.partialorder %v662_v4, 0.0  ;;  %v712_v7 = vmul.f32 0.01, %v662_v4 }
 0x10d   :  { %v737_v9 = vsel %vm687_vm11, %v662_v4, %v712_v7 }
 0x10e   :  { %v579_v12 = vpop.f32.mrf.mxu2  ;;  %1982 = vmatmul.msk.f32.gmra.mxu3 %vm761_vm2, %v737_v9 }
 0x10f   :  { %v634_v13 = vadd.f32 %v579_v12, %v387_v8 }
 0x110   :  { %v389_v15 = vpop.f32.mrf.mxu1 }
 0x111   :  { %v663_v54 = vadd.f32 %v2443_v20, %v634_v13  ;;  %v390_v18 = vadd.f32 %v389_v15, %v2393_v1 }
 0x113   :  { %vm688_vm12 = vcmp.gt.f32.partialorder %v663_v54, 0.0  ;;  %v713_v17 = vmul.f32 0.01, %v663_v54 }
 0x115   :  { %v738_v19 = vsel %vm688_vm12, %v663_v54, %v713_v17 }
 0x116   :  { %v582_v21 = vpop.f32.mrf.mxu2  ;;  %1983 = vmatmul.msk.f32.gmra.mxu3 %vm761_vm2, %v738_v19 }
 0x117   :  { %v635_v60 = vadd.f32 %v582_v21, %v390_v18 }
 0x118   :  { %v392_v22 = vpop.f32.mrf.mxu1 }
 0x119   :  { %v664_v23 = vadd.f32 %v2443_v20, %v635_v60  ;;  %v393_v25 = vadd.f32 %v392_v22, %v2408_v6 }
 0x11b   :  { %vm689_vm13 = vcmp.gt.f32.partialorder %v664_v23, 0.0  ;;  %v714_v24 = vmul.f32 0.01, %v664_v23 }
 0x11d   :  { %v739_v26 = vsel %vm689_vm13, %v664_v23, %v714_v24 }
 0x11e   :  { %v585_v27 = vpop.f32.mrf.mxu2  ;;  %1984 = vmatmul.msk.f32.gmra.mxu3 %vm761_vm2, %v739_v26 }
 0x11f   :  { %v636_v28 = vadd.f32 %v585_v27, %v393_v25 }
 0x120   :  { %v395_v29 = vpop.f32.mrf.mxu1 }
 0x121   :  { %v665_v1 = vadd.f32 %v2443_v20, %v636_v28  ;;  %v396_v33 = vadd.f32 %v395_v29, %v2420_v11 }
 0x123   :  { %vm690_vm14 = vcmp.gt.f32.partialorder %v665_v1, 0.0  ;;  %v715_v32 = vmul.f32 0.01, %v665_v1 }
 0x125   :  { %v740_v6 = vsel %vm690_vm14, %v665_v1, %v715_v32 }
 0x126   :  { %v588_v34 = vpop.f32.mrf.mxu2  ;;  %1985 = vmatmul.msk.f32.gmra.mxu3 %vm761_vm2, %v740_v6 }
 0x127   :  { %v637_v35 = vadd.f32 %v588_v34, %v396_v33 }
 0x128   :  { %v398_v36 = vpop.f32.mrf.mxu1 }
 0x129   :  { %v666_v37 = vadd.f32 %v2443_v20, %v637_v35  ;;  %v399_v40 = vadd.f32 %v398_v36, %v2333_v46 }
 0x12b   :  { %vm691_vm15 = vcmp.gt.f32.partialorder %v666_v37, 0.0  ;;  %v716_v38 = vmul.f32 0.01, %v666_v37 }
 0x12d   :  { %v741_v41 = vsel %vm691_vm15, %v666_v37, %v716_v38 }
 0x12e   :  { %v591_v43 = vpop.f32.mrf.mxu2  ;;  %1986 = vmatmul.msk.f32.gmra.mxu3 %vm761_vm2, %v741_v41 }
 0x12f   :  { %v638_v44 = vadd.f32 %v591_v43, %v399_v40 }
 0x130   :  { %v401_v11 = vpop.f32.mrf.mxu1 }
 0x131   :  { %v667_v45 = vadd.f32 %v2443_v20, %v638_v44  ;;  %v402_v42 = vadd.f32 %v401_v11, %v2352_v52  ;;  %v2569_v52 = vpop.f32.mrf.mxu3 }
 0x133   :  { %vm692_vm1 = vcmp.gt.f32.partialorder %v667_v45, 0.0  ;;  %v717_v47 = vmul.f32 0.01, %v667_v45 }
 0x135   :  { %v742_v49 = vsel %vm692_vm1, %v667_v45, %v717_v47 }
 0x136   :  { %v594_v51 = vpop.f32.mrf.mxu2  ;;  %1987 = vmatmul.msk.f32.gmra.mxu3 %vm761_vm2, %v742_v49 }
 0x137   :  { %v639_v53 = vadd.f32 %v594_v51, %v402_v42 }
 0x138   :  { %v404_v46 = vpop.f32.mrf.mxu1 }
 0x139   :  { %v668_v55 = vadd.f32 %v2443_v20, %v639_v53  ;;  %v405_v57 = vadd.f32 %v404_v46, %v2371_v58  ;;  %v2577_v58 = vld [vmem:[%s3177_s8] ss:$0 sm:$0xff] }
 0x13b   :  { %vm693_vm3 = vcmp.gt.f32.partialorder %v668_v55, 0.0  ;;  %v718_v56 = vmul.f32 0.01, %v668_v55 }
 0x13d   :  { %v743_v59 = vsel %vm693_vm3, %v668_v55, %v718_v56 }
 0x13e   :  { %v597_v61 = vpop.f32.mrf.mxu2  ;;  %1988 = vmatmul.msk.f32.gmra.mxu3 %vm761_vm2, %v743_v59 }
 0x13f   :  { %v640_v62 = vadd.f32 %v597_v61, %v405_v57 }
 0x140   :  { %v407_v63 = vpop.f32.mrf.mxu1 }
 0x141   :  { %v669_v2 = vadd.f32 %v2443_v20, %v640_v62  ;;  %v408_v3 = vadd.f32 %v407_v63, %v2390_v0 }
 0x143   :  { %vm694_vm4 = vcmp.gt.f32.partialorder %v669_v2, 0.0  ;;  %v719_v48 = vmul.f32 0.01, %v669_v2 }
 0x145   :  { %v744_v4 = vsel %vm694_vm4, %v669_v2, %v719_v48 }
 0x146   :  { %v600_v7 = vpop.f32.mrf.mxu2  ;;  %1989 = vmatmul.msk.f32.gmra.mxu3 %vm761_vm2, %v744_v4 }
 0x147   :  { %v641_v8 = vadd.f32 %v600_v7, %v408_v3 }
 0x148   :  { %v410_v9 = vpop.f32.mrf.mxu1 }
 0x149   :  { %v670_v12 = vadd.f32 %v2443_v20, %v641_v8  ;;  %v854_v13 = vpop.f32.mrf.mxu3  ;;  %v411_v0 = vadd.f32 %v410_v9, %v2406_v5 }
 0x14a   :  { %v855_v15 = vadd.f32 %v2577_v58, %v854_v13 }
 0x14b   :  { %vm695_vm5 = vcmp.gt.f32.partialorder %v670_v12, 0.0  ;;  %v720_v54 = vmul.f32 0.01, %v670_v12 }
 0x14c   :  { %v954_v16 = vmul.f32 0.01, %v855_v15  ;;  %vm929_vm6 = vcmp.gt.f32.partialorder %v855_v15, 0.0 }
 0x14d   :  { %v745_v17 = vsel %vm695_vm5, %v670_v12, %v720_v54 }
 0x14e   :  { %v603_v18 = vpop.f32.mrf.mxu2  ;;  %1990 = vmatmul.msk.f32.gmra.mxu3 %vm761_vm2, %v745_v17  ;;  %v979_v19 = vsel %vm929_vm6, %v855_v15, %v954_v16 }
 0x14f   :  { %v642_v21 = vadd.f32 %v603_v18, %v411_v0  ;;  %1998 = vmatmul.msk.f32.vlgmr.msrb.gmra.mxu0 %vm761_vm2, %v979_v19 }
 0x150   :  { %v413_v60 = vpop.f32.mrf.mxu1 }
 0x151   :  { %v671_v22 = vadd.f32 %v2443_v20, %v642_v21  ;;  %v857_v23 = vpop.f32.mrf.mxu3  ;;  %v414_v5 = vadd.f32 %v413_v60, %v2418_v10 }
 0x152   :  { %v858_v24 = vadd.f32 %v2577_v58, %v857_v23 }
 0x153   :  { %vm696_vm7 = vcmp.gt.f32.partialorder %v671_v22, 0.0  ;;  %v721_v25 = vmul.f32 0.01, %v671_v22 }
 0x154   :  { %v955_v26 = vmul.f32 0.01, %v858_v24  ;;  %vm930_vm8 = vcmp.gt.f32.partialorder %v858_v24, 0.0 }
 0x155   :  { %v746_v27 = vsel %vm696_vm7, %v671_v22, %v721_v25 }
 0x156   :  { %v606_v28 = vpop.f32.mrf.mxu2  ;;  %1991 = vmatmul.msk.f32.gmra.mxu3 %vm761_vm2, %v746_v27  ;;  %v980_v29 = vsel %vm930_vm8, %v858_v24, %v955_v26 }
 0x157   :  { %v643_v1 = vadd.f32 %v606_v28, %v414_v5  ;;  %1999 = vmatmul.msk.f32.gmra.mxu0 %vm761_vm2, %v980_v29 }
 0x158   :  { %v416_v31 = vpop.f32.mrf.mxu1 }
 0x159   :  { %v672_v32 = vadd.f32 %v2443_v20, %v643_v1  ;;  %v860_v33 = vpop.f32.mrf.mxu3  ;;  %v417_v10 = vadd.f32 %v416_v31, %v2430_v14 }
 0x15a   :  { %v861_v6 = vadd.f32 %v2577_v58, %v860_v33 }
 0x15b   :  { %vm697_vm9 = vcmp.gt.f32.partialorder %v672_v32, 0.0  ;;  %v722_v34 = vmul.f32 0.01, %v672_v32 }
 0x15c   :  { %v956_v35 = vmul.f32 0.01, %v861_v6  ;;  %vm931_vm10 = vcmp.gt.f32.partialorder %v861_v6, 0.0 }
 0x15d   :  { %v747_v36 = vsel %vm697_vm9, %v672_v32, %v722_v34 }
 0x15e   :  { %v609_v37 = vpop.f32.mrf.mxu2  ;;  %1992 = vmatmul.msk.f32.gmra.mxu3 %vm761_vm2, %v747_v36  ;;  %v981_v38 = vsel %vm931_vm10, %v861_v6, %v956_v35 }
 0x15f   :  { %v644_v40 = vadd.f32 %v609_v37, %v417_v10  ;;  %2000 = vmatmul.msk.f32.gmra.mxu0 %vm761_vm2, %v981_v38 }
 0x160   :  { %v419_v41 = vpop.f32.mrf.mxu1 }
 0x161   :  { %v673_v43 = vadd.f32 %v2443_v20, %v644_v40  ;;  %v863_v44 = vpop.f32.mrf.mxu3  ;;  %v420_v14 = vadd.f32 %v419_v41, %v2549_v30 }
 0x162   :  { %v864_v11 = vadd.f32 %v2577_v58, %v863_v44 }
 0x163   :  { %v723_v45 = vmul.f32 0.01, %v673_v43  ;;  %vm698_vm11 = vcmp.gt.f32.partialorder %v673_v43, 0.0 }
 0x164   :  { %v957_v47 = vmul.f32 0.01, %v864_v11  ;;  %vm932_vm12 = vcmp.gt.f32.partialorder %v864_v11, 0.0 }
 0x165   :  { %v748_v42 = vsel %vm698_vm11, %v673_v43, %v723_v45 }
 0x166   :  { %v612_v49 = vpop.f32.mrf.mxu2  ;;  %1993 = vmatmul.msk.f32.gmra.mxu3 %vm761_vm2, %v748_v42  ;;  %v982_v51 = vsel %vm932_vm12, %v864_v11, %v957_v47 }
 0x167   :  { %v645_v53 = vadd.f32 %v612_v49, %v420_v14  ;;  %2001 = vmatmul.msk.f32.gmra.mxu0 %vm761_vm2, %v982_v51 }
 0x168   :  { %v422_v46 = vpop.f32.mrf.mxu1 }
 0x169   :  { %v674_v55 = vadd.f32 %v2443_v20, %v645_v53  ;;  %v866_v56 = vpop.f32.mrf.mxu3  ;;  %v423_v30 = vadd.f32 %v422_v46, %v2557_v39 }
 0x16a   :  { %v867_v57 = vadd.f32 %v2577_v58, %v866_v56 }
 0x16b   :  { %v724_v59 = vmul.f32 0.01, %v674_v55  ;;  %vm699_vm13 = vcmp.gt.f32.partialorder %v674_v55, 0.0 }
 0x16c   :  { %v958_v61 = vmul.f32 0.01, %v867_v57  ;;  %vm933_vm14 = vcmp.gt.f32.partialorder %v867_v57, 0.0 }
 0x16d   :  { %v749_v62 = vsel %vm699_vm13, %v674_v55, %v724_v59 }
 0x16e   :  { %v615_v63 = vpop.f32.mrf.mxu2  ;;  %1994 = vmatmul.msk.f32.gmra.mxu3 %vm761_vm2, %v749_v62  ;;  %v983_v2 = vsel %vm933_vm14, %v867_v57, %v958_v61 }
 0x16f   :  { %v646_v48 = vadd.f32 %v615_v63, %v423_v30  ;;  %2002 = vmatmul.msk.f32.gmra.mxu0 %vm761_vm2, %v983_v2 }
 0x170   :  { %v425_v3 = vpop.f32.mrf.mxu1 }
 0x171   :  { %v675_v4 = vadd.f32 %v2443_v20, %v646_v48  ;;  %v869_v7 = vpop.f32.mrf.mxu3  ;;  %v426_v39 = vadd.f32 %v425_v3, %v2563_v50  ;;  %v2637_v48 = vld [vmem:[%s3179_s10] ss:$0 sm:$0xff] }
 0x172   :  { %v870_v8 = vadd.f32 %v2577_v58, %v869_v7 }
 0x173   :  { %v725_v9 = vmul.f32 0.01, %v675_v4  ;;  %vm700_vm15 = vcmp.gt.f32.partialorder %v675_v4, 0.0 }
 0x174   :  { %v959_v12 = vmul.f32 0.01, %v870_v8  ;;  %vm934_vm1 = vcmp.gt.f32.partialorder %v870_v8, 0.0 }
 0x175   :  { %v750_v13 = vsel %vm700_vm15, %v675_v4, %v725_v9 }
 0x176   :  { %v618_v15 = vpop.f32.mrf.mxu2  ;;  %1995 = vmatmul.msk.f32.gmra.mxu3 %vm761_vm2, %v750_v13  ;;  %v984_v54 = vsel %vm934_vm1, %v870_v8, %v959_v12 }
 0x177   :  { %v647_v16 = vadd.f32 %v618_v15, %v426_v39  ;;  %2003 = vmatmul.msk.f32.gmra.mxu0 %vm761_vm2, %v984_v54 }
 0x178   :  { %v428_v18 = vpop.f32.mrf.mxu1 }
 0x179   :  { %v676_v0 = vadd.f32 %v2443_v20, %v647_v16  ;;  %v872_v17 = vpop.f32.mrf.mxu3  ;;  %v429_v50 = vadd.f32 %v428_v18, %v2569_v52 }
 0x17a   :  { %v873_v19 = vadd.f32 %v2577_v58, %v872_v17 }
 0x17b   :  { %v726_v21 = vmul.f32 0.01, %v676_v0  ;;  %vm701_vm3 = vcmp.gt.f32.partialorder %v676_v0, 0.0 }
 0x17c   :  { %v960_v60 = vmul.f32 0.01, %v873_v19  ;;  %vm935_vm4 = vcmp.gt.f32.partialorder %v873_v19, 0.0 }
 0x17d   :  { %v751_v22 = vsel %vm701_vm3, %v676_v0, %v726_v21 }
 0x17e   :  { %v621_v23 = vpop.f32.mrf.mxu2  ;;  %1996 = vmatmul.msk.f32.gmra.mxu3 %vm761_vm2, %v751_v22  ;;  %v985_v24 = vsel %vm935_vm4, %v873_v19, %v960_v60 }
 0x17f   :  { %v648_v25 = vadd.f32 %v621_v23, %v429_v50  ;;  %2004 = vmatmul.msk.f32.gmra.mxu0 %vm761_vm2, %v985_v24 }
 0x181   :  { %v677_v26 = vadd.f32 %v2443_v20, %v648_v25  ;;  %v875_v5 = vpop.f32.mrf.mxu3 }
 0x182   :  { %v876_v27 = vadd.f32 %v2577_v58, %v875_v5 }
 0x183   :  { %v727_v28 = vmul.f32 0.01, %v677_v26  ;;  %vm702_vm5 = vcmp.gt.f32.partialorder %v677_v26, 0.0 }
 0x184   :  { %v961_v29 = vmul.f32 0.01, %v876_v27  ;;  %vm936_vm6 = vcmp.gt.f32.partialorder %v876_v27, 0.0 }
 0x185   :  { %v752_v1 = vsel %vm702_vm5, %v677_v26, %v727_v28 }
 0x186   :  { %1997 = vmatmul.msk.f32.gmra.mxu3 %vm761_vm2, %v752_v1  ;;  %v986_v52 = vsel %vm936_vm6, %v876_v27, %v961_v29 }
 0x187   :  { %2005 = vmatmul.msk.f32.gmra.mxu0 %vm761_vm2, %v986_v52 }
 0x189   :  { %v878_v31 = vpop.f32.mrf.mxu3 }
 0x18a   :  { %v879_v32 = vadd.f32 %v2577_v58, %v878_v31 }
 0x18c   :  { %v962_v33 = vmul.f32 0.01, %v879_v32  ;;  %vm937_vm7 = vcmp.gt.f32.partialorder %v879_v32, 0.0 }
 0x18e   :  { %v987_v6 = vsel %vm937_vm7, %v879_v32, %v962_v33 }
 0x18f   :  { %2006 = vmatmul.msk.f32.gmra.mxu0 %vm761_vm2, %v987_v6 }
 0x191   :  { %v881_v20 = vpop.f32.mrf.mxu3 }
 0x192   :  { %v882_v34 = vadd.f32 %v2577_v58, %v881_v20 }
 0x194   :  { %v963_v35 = vmul.f32 0.01, %v882_v34  ;;  %vm938_vm8 = vcmp.gt.f32.partialorder %v882_v34, 0.0 }
 0x196   :  { %v988_v10 = vsel %vm938_vm8, %v882_v34, %v963_v35 }
 0x197   :  { %2007 = vmatmul.msk.f32.gmra.mxu0 %vm761_vm2, %v988_v10 }
 0x199   :  { %v884_v36 = vpop.f32.mrf.mxu3 }
 0x19a   :  { %v885_v37 = vadd.f32 %v2577_v58, %v884_v36 }
 0x19c   :  { %v964_v38 = vmul.f32 0.01, %v885_v37  ;;  %vm939_vm9 = vcmp.gt.f32.partialorder %v885_v37, 0.0 }
 0x19e   :  { %v989_v40 = vsel %vm939_vm9, %v885_v37, %v964_v38 }
 0x19f   :  { %2008 = vmatmul.msk.f32.gmra.mxu0 %vm761_vm2, %v989_v40 }
 0x1a1   :  { %v887_v41 = vpop.f32.mrf.mxu3 }
 0x1a2   :  { %v888_v43 = vadd.f32 %v2577_v58, %v887_v41 }
 0x1a4   :  { %v965_v44 = vmul.f32 0.01, %v888_v43  ;;  %vm940_vm10 = vcmp.gt.f32.partialorder %v888_v43, 0.0 }
 0x1a6   :  { %v990_v11 = vsel %vm940_vm10, %v888_v43, %v965_v44 }
 0x1a7   :  { %2009 = vmatmul.msk.f32.gmra.mxu0 %vm761_vm2, %v990_v11 }
 0x1a9   :  { %v890_v45 = vpop.f32.mrf.mxu3 }
 0x1aa   :  { %v891_v47 = vadd.f32 %v2577_v58, %v890_v45 }
 0x1ac   :  { %v966_v14 = vmul.f32 0.01, %v891_v47  ;;  %vm941_vm11 = vcmp.gt.f32.partialorder %v891_v47, 0.0 }
 0x1ae   :  { %v991_v42 = vsel %vm941_vm11, %v891_v47, %v966_v14 }
 0x1af   :  { %2010 = vmatmul.msk.f32.gmra.mxu0 %vm761_vm2, %v991_v42 }
 0x1b1   :  { %v893_v49 = vpop.f32.mrf.mxu3 }
 0x1b2   :  { %v894_v51 = vadd.f32 %v2577_v58, %v893_v49 }
 0x1b4   :  { %v967_v53 = vmul.f32 0.01, %v894_v51  ;;  %vm942_vm12 = vcmp.gt.f32.partialorder %v894_v51, 0.0 }
 0x1b6   :  { %v992_v46 = vsel %vm942_vm12, %v894_v51, %v967_v53 }
 0x1b7   :  { %2011 = vmatmul.msk.f32.gmra.mxu0 %vm761_vm2, %v992_v46 }
 0x1b9   :  { %v896_v55 = vpop.f32.mrf.mxu3 }
 0x1ba   :  { %v897_v56 = vadd.f32 %v2577_v58, %v896_v55 }
 0x1bc   :  { %v968_v57 = vmul.f32 0.01, %v897_v56  ;;  %vm943_vm13 = vcmp.gt.f32.partialorder %v897_v56, 0.0 }
 0x1be   :  { %v993_v59 = vsel %vm943_vm13, %v897_v56, %v968_v57 }
 0x1bf   :  { %2012 = vmatmul.msk.f32.gmra.mxu0 %vm761_vm2, %v993_v59 }
 0x1c1   :  { %v899_v61 = vpop.f32.mrf.mxu3 }
 0x1c2   :  { %v900_v30 = vadd.f32 %v2577_v58, %v899_v61 }
 0x1c4   :  { %v969_v62 = vmul.f32 0.01, %v900_v30  ;;  %vm944_vm14 = vcmp.gt.f32.partialorder %v900_v30, 0.0 }
 0x1c6   :  { %v994_v63 = vsel %vm944_vm14, %v900_v30, %v969_v62 }
 0x1c7   :  { %2013 = vmatmul.msk.f32.gmra.mxu0 %vm761_vm2, %v994_v63 }
 0x1c9   :  { %v902_v2 = vpop.f32.mrf.mxu3 }
 0x1ca   :  { %v903_v3 = vadd.f32 %v2577_v58, %v902_v2 }
 0x1cc   :  { %v970_v4 = vmul.f32 0.01, %v903_v3  ;;  %v1104_v7 = vpop.f32.mrf.mxu0  ;;  %vm945_vm15 = vcmp.gt.f32.partialorder %v903_v3, 0.0 }
 0x1cd   :  { %v1105_v8 = vadd.f32 %v2637_v48, %v1104_v7 }
 0x1ce   :  { %v995_v9 = vsel %vm945_vm15, %v903_v3, %v970_v4 }
 0x1cf   :  { %2014 = vmatmul.msk.f32.gmra.mxu0 %vm761_vm2, %v995_v9  ;;  %vm1179_vm1 = vcmp.gt.f32.partialorder %v1105_v8, 0.0  ;;  %v1204_v12 = vmul.f32 0.01, %v1105_v8 }
 0x1d1   :  { %v905_v39 = vpop.f32.mrf.mxu3  ;;  %v2642_v13 = vsel %vm1179_vm1, %v1105_v8, %v1204_v12 }
 0x1d2   :  { %v906_v15 = vadd.f32 %v2577_v58, %v905_v39  ;;  %v1254_v54 = vsel %vm96_vm0, %v2642_v13, 0.0 }
 0x1d3   :  { %1255 = vadd.xlane.f32.xlu0 %v1254_v54 }
 0x1d4   :  { %vm946_vm3 = vcmp.gt.f32.partialorder %v906_v15, 0.0  ;;  %v971_v16 = vmul.f32 0.01, %v906_v15  ;;  %v1107_v0 = vpop.f32.mrf.mxu0 }
 0x1d5   :  { %v1108_v17 = vadd.f32 %v2637_v48, %v1107_v0 }
 0x1d6   :  { %v996_v18 = vsel %vm946_vm3, %v906_v15, %v971_v16 }
 0x1d7   :  { %v1205_v19 = vmul.f32 0.01, %v1108_v17  ;;  %2015 = vmatmul.msk.f32.gmra.mxu0 %vm761_vm2, %v996_v18  ;;  %vm1180_vm4 = vcmp.gt.f32.partialorder %v1108_v17, 0.0 }
 0x1d9   :  { %v908_v21 = vpop.f32.mrf.mxu3  ;;  %v2649_v60 = vsel %vm1180_vm4, %v1108_v17, %v1205_v19 }
 0x1da   :  { %v909_v50 = vadd.f32 %v2577_v58, %v908_v21  ;;  %v1257_v22 = vsel %vm96_vm0, %v2649_v60, 0.0 }
 0x1db   :  { %1258 = vadd.xlane.f32.xlu0 %v1257_v22 }
 0x1dc   :  { %vm947_vm5 = vcmp.gt.f32.partialorder %v909_v50, 0.0  ;;  %v972_v23 = vmul.f32 0.01, %v909_v50  ;;  %v1110_v24 = vpop.f32.mrf.mxu0 }
 0x1dd   :  { %v1111_v25 = vadd.f32 %v2637_v48, %v1110_v24 }
 0x1de   :  { %v997_v26 = vsel %vm947_vm5, %v909_v50, %v972_v23 }
 0x1df   :  { %v1206_v5 = vmul.f32 0.01, %v1111_v25  ;;  %2016 = vmatmul.msk.f32.gmra.mxu0 %vm761_vm2, %v997_v26  ;;  %vm1181_vm6 = vcmp.gt.f32.partialorder %v1111_v25, 0.0 }
 0x1e1   :  { %v911_v27 = vpop.f32.mrf.mxu3  ;;  %v2656_v28 = vsel %vm1181_vm6, %v1111_v25, %v1206_v5 }
 0x1e2   :  { %v912_v29 = vadd.f32 %v2577_v58, %v911_v27  ;;  %v1260_v1 = vsel %vm96_vm0, %v2656_v28, 0.0 }
 0x1e3   :  { %1261 = vadd.xlane.f32.xlu1 %v1260_v1 }
 0x1e4   :  { %vm948_vm7 = vcmp.gt.f32.partialorder %v912_v29, 0.0  ;;  %v973_v52 = vmul.f32 0.01, %v912_v29  ;;  %v1113_v31 = vpop.f32.mrf.mxu0 }
 0x1e5   :  { %v1114_v32 = vadd.f32 %v2637_v48, %v1113_v31 }
 0x1e6   :  { %v998_v33 = vsel %vm948_vm7, %v912_v29, %v973_v52 }
 0x1e7   :  { %v1207_v6 = vmul.f32 0.01, %v1114_v32  ;;  %2017 = vmatmul.msk.f32.gmra.mxu0 %vm761_vm2, %v998_v33  ;;  %vm1182_vm8 = vcmp.gt.f32.partialorder %v1114_v32, 0.0 }
 0x1e9   :  { %v914_v20 = vpop.f32.mrf.mxu3  ;;  %v2663_v34 = vsel %vm1182_vm8, %v1114_v32, %v1207_v6 }
 0x1ea   :  { %v915_v35 = vadd.f32 %v2577_v58, %v914_v20  ;;  %v1263_v10 = vsel %vm96_vm0, %v2663_v34, 0.0 }
 0x1eb   :  { %1264 = vadd.xlane.f32.xlu1 %v1263_v10  ;;  %v2084_v10 = vmov 8.0  }
 0x1ec   :  { %vm949_vm9 = vcmp.gt.f32.partialorder %v915_v35, 0.0  ;;  %v974_v36 = vmul.f32 0.01, %v915_v35  ;;  %v1116_v37 = vpop.f32.mrf.mxu0  ;;  %2032 = vrcp.f32 %v2084_v10 }
 0x1ed   :  { %v1117_v38 = vadd.f32 %v2637_v48, %v1116_v37 }
 0x1ee   :  { %v999_v40 = vsel %vm949_vm9, %v915_v35, %v974_v36 }
 0x1ef   :  { %v1208_v41 = vmul.f32 0.01, %v1117_v38  ;;  %2018 = vmatmul.msk.f32.gmra.mxu0 %vm761_vm2, %v999_v40  ;;  %vm1183_vm10 = vcmp.gt.f32.partialorder %v1117_v38, 0.0 }
 0x1f1   :  { %v917_v43 = vpop.f32.mrf.mxu3  ;;  %v2670_v44 = vsel %vm1183_vm10, %v1117_v38, %v1208_v41 }
 0x1f2   :  { %v918_v11 = vadd.f32 %v2577_v58, %v917_v43  ;;  %v1266_v45 = vsel %vm96_vm0, %v2670_v44, 0.0  ;;  %v2033_v40 = vpop.eup %2032 }
 0x1f3   :  { %1267 = vadd.xlane.f32.xlu2 %v1266_v45  ;;  %v1330_v45 = vmul.f32 8.0, %v2033_v40  ;;  %vm1334_vm10 = vweird.f32 %v2033_v40 }
 0x1f4   :  { %vm950_vm11 = vcmp.gt.f32.partialorder %v918_v11, 0.0  ;;  %v975_v47 = vmul.f32 0.01, %v918_v11  ;;  %v1119_v14 = vpop.f32.mrf.mxu0 }
 0x1f5   :  { %v1120_v42 = vadd.f32 %v2637_v48, %v1119_v14 }
 0x1f6   :  { %v1000_v49 = vsel %vm950_vm11, %v918_v11, %v975_v47 }
 0x1f7   :  { %v1209_v51 = vmul.f32 0.01, %v1120_v42  ;;  %2019 = vmatmul.msk.f32.gmra.mxu0 %vm761_vm2, %v1000_v49  ;;  %vm1184_vm12 = vcmp.gt.f32.partialorder %v1120_v42, 0.0 }
 0x1f9   :  { %v920_v53 = vpop.f32.mrf.mxu3  ;;  %v2677_v46 = vsel %vm1184_vm12, %v1120_v42, %v1209_v51  ;;  %v1331_v42 = vsub.f32 1.0, %v1330_v45 }
 0x1fa   :  { %v921_v55 = vadd.f32 %v2577_v58, %v920_v53  ;;  %v1269_v56 = vsel %vm96_vm0, %v2677_v46, 0.0 }
 0x1fb   :  { %1270 = vadd.xlane.f32.xlu2 %v1269_v56 }
 0x1fc   :  { %vm951_vm13 = vcmp.gt.f32.partialorder %v921_v55, 0.0  ;;  %v976_v57 = vmul.f32 0.01, %v921_v55  ;;  %v1122_v59 = vpop.f32.mrf.mxu0 }
 0x1fd   :  { %v1123_v61 = vadd.f32 %v2637_v48, %v1122_v59 }
 0x1fe   :  { %v1001_v30 = vsel %vm951_vm13, %v921_v55, %v976_v57  ;;  %v1332_v55 = vmul.f32 %v2033_v40, %v1331_v42 }
 0x1ff   :  { %v1210_v62 = vmul.f32 0.01, %v1123_v61  ;;  %2020 = vmatmul.msk.f32.gmra.mxu0 %vm761_vm2, %v1001_v30  ;;  %vm1185_vm14 = vcmp.gt.f32.partialorder %v1123_v61, 0.0 }
 0x200   :  { %v1333_v59 = vadd.f32 %v2033_v40, %v1332_v55 }
 0x201   :  { %v923_v63 = vpop.f32.mrf.mxu3  ;;  %v2684_v2 = vsel %vm1185_vm14, %v1123_v61, %v1210_v62 }
 0x202   :  { %v924_v3 = vadd.f32 %v2577_v58, %v923_v63  ;;  %v1272_v4 = vsel %vm96_vm0, %v2684_v2, 0.0  ;;  %v2732_v63 = vsel %vm1334_vm10, %v2033_v40, %v1333_v59 }
 0x203   :  { %1273 = vadd.xlane.f32.xlu0 %v1272_v4 }
 0x204   :  { %vm952_vm15 = vcmp.gt.f32.partialorder %v924_v3, 0.0  ;;  %v977_v7 = vmul.f32 0.01, %v924_v3  ;;  %v1125_v8 = vpop.f32.mrf.mxu0 }
 0x205   :  { %v1126_v9 = vadd.f32 %v2637_v48, %v1125_v8 }
 0x206   :  { %v1002_v12 = vsel %vm952_vm15, %v924_v3, %v977_v7 }
 0x207   :  { %v1211_v39 = vmul.f32 0.01, %v1126_v9  ;;  %2021 = vmatmul.msk.f32.gmra.mxu0 %vm761_vm2, %v1002_v12  ;;  %vm1186_vm1 = vcmp.gt.f32.partialorder %v1126_v9, 0.0 }
 0x209   :  { %v926_v15 = vpop.f32.mrf.mxu3  ;;  %v2691_v54 = vsel %vm1186_vm1, %v1126_v9, %v1211_v39 }
 0x20a   :  { %v927_v16 = vadd.f32 %v2577_v58, %v926_v15  ;;  %v1275_v0 = vsel %vm96_vm0, %v2691_v54, 0.0 }
 0x20b   :  { %1276 = vadd.xlane.f32.xlu1 %v1275_v0 }
 0x20c   :  { %vm953_vm3 = vcmp.gt.f32.partialorder %v927_v16, 0.0  ;;  %v978_v17 = vmul.f32 0.01, %v927_v16  ;;  %v1128_v18 = vpop.f32.mrf.mxu0 }
 0x20d   :  { %v1129_v19 = vadd.f32 %v2637_v48, %v1128_v18 }
 0x20e   :  { %v1003_v21 = vsel %vm953_vm3, %v927_v16, %v978_v17 }
 0x20f   :  { %v1212_v50 = vmul.f32 0.01, %v1129_v19  ;;  %2022 = vmatmul.msk.f32.gmra.mxu0 %vm761_vm2, %v1003_v21  ;;  %vm1187_vm4 = vcmp.gt.f32.partialorder %v1129_v19, 0.0 }
 0x211   :  { %v2698_v22 = vsel %vm1187_vm4, %v1129_v19, %v1212_v50 }
 0x212   :  { %v1278_v23 = vsel %vm96_vm0, %v2698_v22, 0.0 }
 0x213   :  { %1279 = vadd.xlane.f32.xlu2 %v1278_v23 }
 0x214   :  { %v1131_v58 = vpop.f32.mrf.mxu0 }
 0x215   :  { %v1132_v24 = vadd.f32 %v2637_v48, %v1131_v58 }
 0x217   :  { %v1213_v25 = vmul.f32 0.01, %v1132_v24  ;;  %vm1188_vm5 = vcmp.gt.f32.partialorder %v1132_v24, 0.0 }
 0x219   :  { %v2703_v26 = vsel %vm1188_vm5, %v1132_v24, %v1213_v25 }
 0x21a   :  { %v1281_v5 = vsel %vm96_vm0, %v2703_v26, 0.0 }
 0x21b   :  { %1282 = vadd.xlane.f32.xlu0 %v1281_v5 }
 0x21c   :  { %v1134_v27 = vpop.f32.mrf.mxu0 }
 0x21d   :  { %v1135_v29 = vadd.f32 %v2637_v48, %v1134_v27 }
 0x21f   :  { %v1214_v1 = vmul.f32 0.01, %v1135_v29  ;;  %vm1189_vm2 = vcmp.gt.f32.partialorder %v1135_v29, 0.0 }
 0x221   :  { %v2708_v52 = vsel %vm1189_vm2, %v1135_v29, %v1214_v1 }
 0x222   :  { %v1284_v31 = vsel %vm96_vm0, %v2708_v52, 0.0 }
 0x223   :  { %1285 = vadd.xlane.f32.xlu1 %v1284_v31 }
 0x224   :  { %v1137_v32 = vpop.f32.mrf.mxu0 }
 0x225   :  { %v1138_v33 = vadd.f32 %v2637_v48, %v1137_v32 }
 0x227   :  { %v1215_v6 = vmul.f32 0.01, %v1138_v33  ;;  %vm1190_vm6 = vcmp.gt.f32.partialorder %v1138_v33, 0.0 }
 0x229   :  { %v2713_v20 = vsel %vm1190_vm6, %v1138_v33, %v1215_v6 }
 0x22a   :  { %v1287_v35 = vsel %vm96_vm0, %v2713_v20, 0.0 }
 0x22b   :  { %1288 = vadd.xlane.f32.xlu2 %v1287_v35 }
 0x22c   :  { %v1140_v36 = vpop.f32.mrf.mxu0 }
 0x22d   :  { %v1141_v37 = vadd.f32 %v2637_v48, %v1140_v36 }
 0x22f   :  { %v1216_v38 = vmul.f32 0.01, %v1141_v37  ;;  %vm1191_vm7 = vcmp.gt.f32.partialorder %v1141_v37, 0.0 }
 0x231   :  { %v2718_v41 = vsel %vm1191_vm7, %v1141_v37, %v1216_v38 }
 0x232   :  { %v1290_v43 = vsel %vm96_vm0, %v2718_v41, 0.0 }
 0x233   :  { %1291 = vadd.xlane.f32.xlu0 %v1290_v43 }
 0x234   :  { %v1143_v11 = vpop.f32.mrf.mxu0 }
 0x235   :  { %v1144_v47 = vadd.f32 %v2637_v48, %v1143_v11 }
 0x237   :  { %v1217_v14 = vmul.f32 0.01, %v1144_v47  ;;  %vm1192_vm8 = vcmp.gt.f32.partialorder %v1144_v47, 0.0 }
 0x239   :  { %v2723_v49 = vsel %vm1192_vm8, %v1144_v47, %v1217_v14 }
 0x23a   :  { %v1293_v51 = vsel %vm96_vm0, %v2723_v49, 0.0 }
 0x23b   :  { %1294 = vadd.xlane.f32.xlu1 %v1293_v51 }
 0x23c   :  { %v1146_v53 = vpop.f32.mrf.mxu0 }
 0x23d   :  { %v1147_v56 = vadd.f32 %v2637_v48, %v1146_v53 }
 0x23f   :  { %v1218_v57 = vmul.f32 0.01, %v1147_v56  ;;  %vm1193_vm9 = vcmp.gt.f32.partialorder %v1147_v56, 0.0 }
 0x241   :  { %v2728_v61 = vsel %vm1193_vm9, %v1147_v56, %v1218_v57 }
 0x242   :  { %v1296_v30 = vsel %vm96_vm0, %v2728_v61, 0.0 }
 0x243   :  { %1297 = vadd.xlane.f32.xlu2 %v1296_v30 }
 0x244   :  { %v1149_v62 = vpop.f32.mrf.mxu0 }
 0x245   :  { %v1150_v3 = vadd.f32 %v2637_v48, %v1149_v62 }
 0x246   :  { %v1256_v4 = vpop.xlane.xlu0 %1255 }
 0x247   :  { %v1219_v7 = vmul.f32 0.01, %v1150_v3  ;;  %v1336_v8 = vmul.f32 %v2732_v63, %v1256_v4  ;;  %vm1194_vm11 = vcmp.gt.f32.partialorder %v1150_v3, 0.0 }
 0x249   :  { %v2737_v9 = vsub.f32 %v2642_v13, %v1336_v8  ;;  %v2739_v12 = vsel %vm1194_vm11, %v1150_v3, %v1219_v7 }
 0x24a   :  { %v1299_v39 = vsel %vm96_vm0, %v2739_v12, 0.0 }
 0x24b   :  { %1300 = vadd.xlane.f32.xlu0 %v1299_v39  ;;  %v1386_v15 = vmul.f32 %v2737_v9, %v2737_v9 }
 0x24c   :  { %v1152_v16 = vpop.f32.mrf.mxu0 }
 0x24d   :  { %v1153_v0 = vadd.f32 %v2637_v48, %v1152_v16  ;;  %v1411_v17 = vsel %vm96_vm0, %v1386_v15, 0.0 }
 0x24e   :  { %1412 = vadd.xlane.f32.xlu1 %v1411_v17  ;;  %v1259_v18 = vpop.xlane.xlu0 %1258 }
 0x24f   :  { %v1220_v19 = vmul.f32 0.01, %v1153_v0  ;;  %v1337_v13 = vmul.f32 %v2732_v63, %v1259_v18  ;;  %vm1195_vm12 = vcmp.gt.f32.partialorder %v1153_v0, 0.0 }
 0x251   :  { %v2749_v21 = vsub.f32 %v2649_v60, %v1337_v13  ;;  %v2751_v50 = vsel %vm1195_vm12, %v1153_v0, %v1220_v19 }
 0x252   :  { %v1302_v25 = vsel %vm96_vm0, %v2751_v50, 0.0 }
 0x253   :  { %v1387_v23 = vmul.f32 %v2749_v21, %v2749_v21 }
 0x254   :  { %v1155_v58 = vpop.f32.mrf.mxu0 }
 0x255   :  { %v1156_v24 = vadd.f32 %v2637_v48, %v1155_v58  ;;  %v1414_v5 = vsel %vm96_vm0, %v1387_v23, 0.0 }
 0x256   :  { %v1262_v27 = vpop.xlane.xlu1 %1261  ;;  %1303 = vadd.xlane.f32.xlu1 %v1302_v25  ;;  %1415 = vadd.xlane.f32.xlu2 %v1414_v5 }
 0x257   :  { %v1221_v29 = vmul.f32 0.01, %v1156_v24  ;;  %v1338_v60 = vmul.f32 %v2732_v63, %v1262_v27  ;;  %vm1196_vm13 = vcmp.gt.f32.partialorder %v1156_v24, 0.0 }
 0x259   :  { %v2761_v1 = vsub.f32 %v2656_v28, %v1338_v60  ;;  %v2763_v31 = vsel %vm1196_vm13, %v1156_v24, %v1221_v29 }
 0x25a   :  { %v1305_v10 = vsel %vm96_vm0, %v2763_v31, 0.0 }
 0x25b   :  { %v1388_v32 = vmul.f32 %v2761_v1, %v2761_v1 }
 0x25c   :  { %v1158_v33 = vpop.f32.mrf.mxu0 }
 0x25d   :  { %v1159_v6 = vadd.f32 %v2637_v48, %v1158_v33  ;;  %v1417_v35 = vsel %vm96_vm0, %v1388_v32, 0.0 }
 0x25e   :  { %v1265_v36 = vpop.xlane.xlu1 %1264  ;;  %1418 = vadd.xlane.f32.xlu0 %v1417_v35  ;;  %1306 = vadd.xlane.f32.xlu2 %v1305_v10 }
 0x25f   :  { %v1222_v37 = vmul.f32 0.01, %v1159_v6  ;;  %v1339_v28 = vmul.f32 %v2732_v63, %v1265_v36  ;;  %vm1197_vm14 = vcmp.gt.f32.partialorder %v1159_v6, 0.0 }
 0x261   :  { %v2773_v38 = vsub.f32 %v2663_v34, %v1339_v28  ;;  %v2775_v40 = vsel %vm1197_vm14, %v1159_v6, %v1222_v37 }
 0x262   :  { %v1308_v47 = vsel %vm96_vm0, %v2775_v40, 0.0 }
 0x263   :  { %v1389_v43 = vmul.f32 %v2773_v38, %v2773_v38 }
 0x264   :  { %v1161_v11 = vpop.f32.mrf.mxu0 }
 0x265   :  { %v1162_v45 = vadd.f32 %v2637_v48, %v1161_v11  ;;  %v1420_v14 = vsel %vm96_vm0, %v1389_v43, 0.0 }
 0x266   :  { %v1268_v42 = vpop.xlane.xlu2 %1267  ;;  %1309 = vadd.xlane.f32.xlu0 %v1308_v47  ;;  %1421 = vadd.xlane.f32.xlu1 %v1420_v14 }
 0x267   :  { %v1223_v51 = vmul.f32 0.01, %v1162_v45  ;;  %v1340_v34 = vmul.f32 %v2732_v63, %v1268_v42  ;;  %vm1198_vm15 = vcmp.gt.f32.partialorder %v1162_v45, 0.0 }
 0x269   :  { %v2785_v53 = vsub.f32 %v2670_v44, %v1340_v34  ;;  %v2787_v55 = vsel %vm1198_vm15, %v1162_v45, %v1223_v51 }
 0x26a   :  { %v1311_v30 = vsel %vm96_vm0, %v2787_v55, 0.0 }
 0x26b   :  { %v1390_v56 = vmul.f32 %v2785_v53, %v2785_v53 }
 0x26c   :  { %v1164_v57 = vpop.f32.mrf.mxu0 }
 0x26d   :  { %v1165_v59 = vadd.f32 %v2637_v48, %v1164_v57  ;;  %v1423_v62 = vsel %vm96_vm0, %v1390_v56, 0.0 }
 0x26e   :  { %v1271_v3 = vpop.xlane.xlu2 %1270  ;;  %1312 = vadd.xlane.f32.xlu1 %v1311_v30  ;;  %1424 = vadd.xlane.f32.xlu2 %v1423_v62 }
 0x26f   :  { %v1224_v4 = vmul.f32 0.01, %v1165_v59  ;;  %v1341_v44 = vmul.f32 %v2732_v63, %v1271_v3  ;;  %vm1199_vm1 = vcmp.gt.f32.partialorder %v1165_v59, 0.0 }
 0x271   :  { %v2797_v7 = vsub.f32 %v2677_v46, %v1341_v44  ;;  %v2799_v8 = vsel %vm1199_vm1, %v1165_v59, %v1224_v4 }
 0x272   :  { %v1314_v17 = vsel %vm96_vm0, %v2799_v8, 0.0 }
 0x273   :  { %v1391_v39 = vmul.f32 %v2797_v7, %v2797_v7 }
 0x274   :  { %v1167_v15 = vpop.f32.mrf.mxu0 }
 0x275   :  { %v1168_v16 = vadd.f32 %v2637_v48, %v1167_v15  ;;  %v1426_v0 = vsel %vm96_vm0, %v1391_v39, 0.0 }
 0x276   :  { %1427 = vadd.xlane.f32.xlu0 %v1426_v0  ;;  %1315 = vadd.xlane.f32.xlu2 %v1314_v17  ;;  %v1274_v18 = vpop.xlane.xlu0 %1273 }
 0x277   :  { %v1225_v19 = vmul.f32 0.01, %v1168_v16  ;;  %v1342_v46 = vmul.f32 %v2732_v63, %v1274_v18  ;;  %vm1200_vm3 = vcmp.gt.f32.partialorder %v1168_v16, 0.0 }
 0x279   :  { %v2809_v13 = vsub.f32 %v2684_v2, %v1342_v46  ;;  %v2811_v23 = vsel %vm1200_vm3, %v1168_v16, %v1225_v19 }
 0x27a   :  { %v1317_v5 = vsel %vm96_vm0, %v2811_v23, 0.0 }
 0x27b   :  { %v1392_v58 = vmul.f32 %v2809_v13, %v2809_v13 }
 0x27c   :  { %v1170_v24 = vpop.f32.mrf.mxu0 }
 0x27d   :  { %v1171_v25 = vadd.f32 %v2637_v48, %v1170_v24  ;;  %v1429_v27 = vsel %vm96_vm0, %v1392_v58, 0.0 }
 0x27e   :  { %1318 = vadd.xlane.f32.xlu0 %v1317_v5  ;;  %1430 = vadd.xlane.f32.xlu1 %v1429_v27  ;;  %v1277_v2 = vpop.xlane.xlu1 %1276 }
 0x27f   :  { %v1226_v29 = vmul.f32 0.01, %v1171_v25  ;;  %vm1201_vm4 = vcmp.gt.f32.partialorder %v1171_v25, 0.0  ;;  %v1343_v35 = vmul.f32 %v2732_v63, %v1277_v2 }
 0x281   :  { %v2819_v60 = vsel %vm1201_vm4, %v1171_v25, %v1226_v29  ;;  %v2828_v37 = vsub.f32 %v2691_v54, %v1343_v35 }
 0x282   :  { %v1320_v6 = vsel %vm96_vm0, %v2819_v60, 0.0 }
 0x283   :  { %v1393_v42 = vmul.f32 %v2828_v37, %v2828_v37 }
 0x284   :  { %v1173_v32 = vpop.f32.mrf.mxu0 }
 0x285   :  { %v1174_v33 = vadd.f32 %v2637_v48, %v1173_v32  ;;  %v1432_v59 = vsel %vm96_vm0, %v1393_v42, 0.0 }
 0x286   :  { %1321 = vadd.xlane.f32.xlu1 %v1320_v6  ;;  %v1280_v43 = vpop.xlane.xlu2 %1279 }
 0x287   :  { %v1227_v10 = vmul.f32 0.01, %v1174_v33  ;;  %vm1202_vm5 = vcmp.gt.f32.partialorder %v1174_v33, 0.0  ;;  %v1344_v47 = vmul.f32 %v2732_v63, %v1280_v43 }
 0x289   :  { %v2825_v36 = vsel %vm1202_vm5, %v1174_v33, %v1227_v10  ;;  %v2843_v57 = vsub.f32 %v2698_v22, %v1344_v47 }
 0x28a   :  { %v1323_v28 = vsel %vm96_vm0, %v2825_v36, 0.0 }
 0x28b   :  { %1324 = vadd.xlane.f32.xlu2 %v1323_v28 }
 0x28c   :  { %v1176_v11 = vpop.f32.mrf.mxu0 }
 0x28d   :  { %v1177_v45 = vadd.f32 %v2637_v48, %v1176_v11 }
 0x28e   :  { %v1283_v14 = vpop.xlane.xlu0 %1282 }
 0x28f   :  { %v1228_v51 = vmul.f32 0.01, %v1177_v45  ;;  %v1345_v34 = vmul.f32 %v2732_v63, %v1283_v14  ;;  %vm1203_vm2 = vcmp.gt.f32.partialorder %v1177_v45, 0.0 }
 0x291   :  { %v2838_v54 = vsub.f32 %v2703_v26, %v1345_v34  ;;  %v2840_v56 = vsel %vm1203_vm2, %v1177_v45, %v1228_v51  ;;  %v1394_v26 = vmul.f32 %v2843_v57, %v2843_v57 }
 0x292   :  { %v1326_v48 = vsel %vm96_vm0, %v2840_v56, 0.0 }
 0x293   :  { %1327 = vadd.xlane.f32.xlu0 %v1326_v48  ;;  %1433 = vadd.xlane.f32.xlu2 %v1432_v59  ;;  %v1395_v30 = vmul.f32 %v2838_v54, %v2838_v54  ;;  %v1435_v44 = vsel %vm96_vm0, %v1394_v26, 0.0 }
 0x295   :  { %v1438_v62 = vsel %vm96_vm0, %v1395_v30, 0.0 }
 0x296   :  { %v1286_v3 = vpop.xlane.xlu1 %1285  ;;  %1439 = vadd.xlane.f32.xlu1 %v1438_v62 }
 0x297   :  { %v1346_v22 = vmul.f32 %v2732_v63, %v1286_v3 }
 0x299   :  { %v2855_v4 = vsub.f32 %v2708_v52, %v1346_v22 }
 0x29b   :  { %1436 = vadd.xlane.f32.xlu0 %v1435_v44  ;;  %v1396_v39 = vmul.f32 %v2855_v4, %v2855_v4 }
 0x29d   :  { %v1441_v15 = vsel %vm96_vm0, %v1396_v39, 0.0 }
 0x29e   :  { %v1289_v16 = vpop.xlane.xlu2 %1288  ;;  %1442 = vadd.xlane.f32.xlu2 %v1441_v15 }
 0x29f   :  { %v1347_v0 = vmul.f32 %v2732_v63, %v1289_v16 }
 0x2a1   :  { %v2863_v17 = vsub.f32 %v2713_v20, %v1347_v0 }
 0x2a3   :  { %v1397_v18 = vmul.f32 %v2863_v17, %v2863_v17 }
 0x2a5   :  { %v1444_v52 = vsel %vm96_vm0, %v1397_v18, 0.0 }
 0x2a6   :  { %1445 = vadd.xlane.f32.xlu0 %v1444_v52  ;;  %v1292_v19 = vpop.xlane.xlu0 %1291 }
 0x2a7   :  { %v1348_v46 = vmul.f32 %v2732_v63, %v1292_v19 }
 0x2a9   :  { %v2870_v58 = vsub.f32 %v2718_v41, %v1348_v46 }
 0x2ab   :  { %v1398_v24 = vmul.f32 %v2870_v58, %v2870_v58 }
 0x2ad   :  { %v1447_v25 = vsel %vm96_vm0, %v1398_v24, 0.0  ;;  %v2913_v24 = vld [vmem:[%s3180_s11] ss:$0 sm:$0xff] }
 0x2ae   :  { %v1295_v5 = vpop.xlane.xlu1 %1294  ;;  %1448 = vadd.xlane.f32.xlu1 %v1447_v25 }
 0x2af   :  { %v1349_v20 = vmul.f32 %v2732_v63, %v1295_v5 }
 0x2b1   :  { %v2877_v27 = vsub.f32 %v2723_v49, %v1349_v20 }
 0x2b3   :  { %v1399_v29 = vmul.f32 %v2877_v27, %v2877_v27 }
 0x2b5   :  { %v1450_v2 = vsel %vm96_vm0, %v1399_v29, 0.0 }
 0x2b6   :  { %v1298_v32 = vpop.xlane.xlu2 %1297  ;;  %1451 = vadd.xlane.f32.xlu2 %v1450_v2 }
 0x2b7   :  { %v1350_v41 = vmul.f32 %v2732_v63, %v1298_v32 }
 0x2b9   :  { %v2884_v33 = vsub.f32 %v2728_v61, %v1350_v41 }
 0x2bb   :  { %v1400_v6 = vmul.f32 %v2884_v33, %v2884_v33 }
 0x2bd   :  { %v1453_v35 = vsel %vm96_vm0, %v1400_v6, 0.0 }
 0x2be   :  { %1454 = vadd.xlane.f32.xlu0 %v1453_v35  ;;  %v1301_v49 = vpop.xlane.xlu0 %1300 }
 0x2bf   :  { %v1351_v10 = vmul.f32 %v2732_v63, %v1301_v49 }
 0x2c1   :  { %v2891_v28 = vsub.f32 %v2739_v12, %v1351_v10  ;;  %v1413_v43 = vpop.xlane.xlu1 %1412 }
 0x2c2   :  { %v1486_v11 = vmul.f32 %v1413_v43, %v2732_v63 }
 0x2c3   :  { %v1401_v45 = vmul.f32 %v2891_v28, %v2891_v28 }
 0x2c4   :  { %v1511_v61 = vadd.f32 1e-05, %v1486_v11 }
 0x2c5   :  { %v1456_v47 = vsel %vm96_vm0, %v1401_v45, 0.0 }
 0x2c6   :  { %2034 = vrsqrt.f32 %v1511_v61  ;;  %1457 = vadd.xlane.f32.xlu1 %v1456_v47  ;;  %vm1542_vm7 = vweird.f32 %v1511_v61 }
 0x2c9   :  { %v1304_v14 = vpop.xlane.xlu1 %1303  ;;  %v1416_v42 = vpop.xlane.xlu2 %1415 }
 0x2ca   :  { %v1352_v51 = vmul.f32 %v2732_v63, %v1304_v14  ;;  %v1487_v34 = vmul.f32 %v1416_v42, %v2732_v63 }
 0x2cc   :  { %v2035_v48 = vpop.eup %2034  ;;  %v2900_v12 = vsub.f32 %v2751_v50, %v1352_v51  ;;  %v1512_v59 = vadd.f32 1e-05, %v1487_v34 }
 0x2cd   :  { %v1537_v30 = vmul.f32 %v2035_v48, %v1511_v61  ;;  %vm1543_vm6 = vweird.f32 %v2035_v48 }
 0x2ce   :  { %2036 = vrsqrt.f32 %v1512_v59  ;;  %v1402_v62 = vmul.f32 %v2900_v12, %v2900_v12  ;;  %vm1544_vm8 = vmor %vm1542_vm7, %vm1543_vm6  ;;  %vm1552_vm10 = vweird.f32 %v1512_v59 }
 0x2cf   :  { %v1538_v3 = vmul.f32 %v2035_v48, %v1537_v30 }
 0x2d0   :  { %v1459_v26 = vsel %vm96_vm0, %v1402_v62, 0.0 }
 0x2d1   :  { %v1539_v22 = vmul.f32 0.5, %v1538_v3  ;;  %1460 = vadd.xlane.f32.xlu2 %v1459_v26  ;;  %v1307_v44 = vpop.xlane.xlu2 %1306  ;;  %v1419_v39 = vpop.xlane.xlu0 %1418 }
 0x2d2   :  { %v1353_v15 = vmul.f32 %v2732_v63, %v1307_v44  ;;  %v1488_v16 = vmul.f32 %v1419_v39, %v2732_v63 }
 0x2d3   :  { %v1540_v0 = vsub.f32 1.5, %v1539_v22 }
 0x2d4   :  { %v2037_v50 = vpop.eup %2036  ;;  %v2908_v18 = vsub.f32 %v2763_v31, %v1353_v15  ;;  %v1513_v52 = vadd.f32 1e-05, %v1488_v16  ;;  %v2920_v31 = vld [vmem:[%s3181_s12] ss:$0 sm:$0xff] }
 0x2d5   :  { %v1541_v19 = vmul.f32 %v2035_v48, %v1540_v0  ;;  %v1547_v46 = vmul.f32 %v2037_v50, %v1512_v59  ;;  %vm1553_vm9 = vweird.f32 %v2037_v50 }
 0x2d6   :  { %2038 = vrsqrt.f32 %v1513_v52  ;;  %v1403_v25 = vmul.f32 %v2908_v18, %v2908_v18  ;;  %vm1554_vm11 = vmor %vm1552_vm10, %vm1553_vm9  ;;  %vm1562_vm13 = vweird.f32 %v1513_v52 }
 0x2d7   :  { %v1545_v5 = vsel %vm1544_vm8, %v2035_v48, %v1541_v19  ;;  %v1548_v20 = vmul.f32 %v2037_v50, %v1547_v46 }
 0x2d8   :  { %v1786_v29 = vmul.f32 %v1545_v5, %v2737_v9  ;;  %v1462_v2 = vsel %vm96_vm0, %v1403_v25, 0.0 }
 0x2d9   :  { %v1549_v32 = vmul.f32 0.5, %v1548_v20  ;;  %v1422_v41 = vpop.xlane.xlu1 %1421  ;;  %1463 = vadd.xlane.f32.xlu0 %v1462_v2  ;;  %v1310_v6 = vpop.xlane.xlu0 %1309 }
 0x2da   :  { %v1815_v35 = vmul.f32 %v2913_v24, %v1786_v29  ;;  %v1489_v49 = vmul.f32 %v1422_v41, %v2732_v63  ;;  %v1354_v10 = vmul.f32 %v2732_v63, %v1310_v6 }
 0x2db   :  { %v1550_v43 = vsub.f32 1.5, %v1549_v32 }
 0x2dc   :  { %v2039_v11 = vpop.eup %2038  ;;  %v1844_v45 = vadd.f32 %v2920_v31, %v1815_v35  ;;  %v1514_v61 = vadd.f32 1e-05, %v1489_v49  ;;  %v2929_v9 = vsub.f32 %v2775_v40, %v1354_v10 }
 0x2dd   :  { %v1551_v47 = vmul.f32 %v2037_v50, %v1550_v43  ;;  %v1557_v14 = vmul.f32 %v2039_v11, %v1513_v52  ;;  %vm1563_vm12 = vweird.f32 %v2039_v11 }
 0x2de   :  { %1869 = vst.msk [vmem:[%s3182_s13] sm:$0xff] %vm96_vm0, %v1844_v45  ;;  %2040 = vrsqrt.f32 %v1514_v61  ;;  %v1404_v42 = vmul.f32 %v2929_v9, %v2929_v9  ;;  %vm1564_vm14 = vmor %vm1562_vm13, %vm1563_vm12  ;;  %vm1572_vm1 = vweird.f32 %v1514_v61 }
 0x2df   :  { %v1555_v51 = vsel %vm1554_vm11, %v2037_v50, %v1551_v47  ;;  %v1558_v34 = vmul.f32 %v2039_v11, %v1557_v14 }
 0x2e0   :  { %v1787_v48 = vmul.f32 %v1555_v51, %v2749_v21  ;;  %v1465_v40 = vsel %vm96_vm0, %v1404_v42, 0.0 }
 0x2e1   :  { %v1559_v30 = vmul.f32 0.5, %v1558_v34  ;;  %v1313_v62 = vpop.xlane.xlu1 %1312  ;;  %v1425_v59 = vpop.xlane.xlu2 %1424  ;;  %1466 = vadd.xlane.f32.xlu1 %v1465_v40 }
 0x2e2   :  { %v1816_v3 = vmul.f32 %v2913_v24, %v1787_v48  ;;  %v1355_v26 = vmul.f32 %v2732_v63, %v1313_v62  ;;  %v1490_v22 = vmul.f32 %v1425_v59, %v2732_v63 }
 0x2e3   :  { %v1560_v44 = vsub.f32 1.5, %v1559_v30 }
 0x2e4   :  { %v2041_v39 = vpop.eup %2040  ;;  %v1845_v15 = vadd.f32 %v2920_v31, %v1816_v3  ;;  %v2944_v16 = vsub.f32 %v2787_v55, %v1355_v26  ;;  %v1515_v21 = vadd.f32 1e-05, %v1490_v22 }
 0x2e5   :  { %v1561_v0 = vmul.f32 %v2039_v11, %v1560_v44  ;;  %v1567_v50 = vmul.f32 %v2041_v39, %v1514_v61  ;;  %vm1573_vm15 = vweird.f32 %v2041_v39 }
 0x2e6   :  { %1870 = vst.msk [vmem:[%s3182_s13 + $0x8] sm:$0xff] %vm96_vm0, %v1845_v15  ;;  %2042 = vrsqrt.f32 %v1515_v21  ;;  %v1405_v19 = vmul.f32 %v2944_v16, %v2944_v16  ;;  %vm1574_vm3 = vmor %vm1572_vm1, %vm1573_vm15  ;;  %vm1582_vm5 = vweird.f32 %v1515_v21 }
 0x2e7   :  { %v1565_v46 = vsel %vm1564_vm14, %v2039_v11, %v1561_v0  ;;  %v1568_v25 = vmul.f32 %v2041_v39, %v1567_v50 }
 0x2e8   :  { %v1788_v5 = vmul.f32 %v1565_v46, %v2761_v1  ;;  %v1468_v55 = vsel %vm96_vm0, %v1405_v19, 0.0 }
 0x2e9   :  { %v1569_v20 = vmul.f32 0.5, %v1568_v25  ;;  %1469 = vadd.xlane.f32.xlu2 %v1468_v55  ;;  %v1316_v52 = vpop.xlane.xlu2 %1315  ;;  %v1428_v29 = vpop.xlane.xlu0 %1427 }
 0x2ea   :  { %v1817_v2 = vmul.f32 %v2913_v24, %v1788_v5  ;;  %v1356_v32 = vmul.f32 %v2732_v63, %v1316_v52  ;;  %v1491_v41 = vmul.f32 %v1428_v29, %v2732_v63 }
 0x2eb   :  { %v1570_v6 = vsub.f32 1.5, %v1569_v20 }
 0x2ec   :  { %v2043_v35 = vpop.eup %2042  ;;  %v1846_v49 = vadd.f32 %v2920_v31, %v1817_v2  ;;  %v2959_v10 = vsub.f32 %v2799_v8, %v1356_v32  ;;  %v1516_v1 = vadd.f32 1e-05, %v1491_v41 }
 0x2ed   :  { %v1571_v43 = vmul.f32 %v2041_v39, %v1570_v6  ;;  %v1577_v11 = vmul.f32 %v2043_v35, %v1515_v21  ;;  %vm1583_vm4 = vweird.f32 %v2043_v35 }
 0x2ee   :  { %1871 = vst.msk [vmem:[%s3182_s13 + $0x10] sm:$0xff] %vm96_vm0, %v1846_v49  ;;  %2044 = vrsqrt.f32 %v1516_v1  ;;  %v1406_v45 = vmul.f32 %v2959_v10, %v2959_v10  ;;  %vm1584_vm2 = vmor %vm1582_vm5, %vm1583_vm4  ;;  %vm1592_vm7 = vweird.f32 %v1516_v1 }
 0x2ef   :  { %v1575_v47 = vsel %vm1574_vm3, %v2041_v39, %v1571_v43  ;;  %v1578_v14 = vmul.f32 %v2043_v35, %v1577_v11 }
 0x2f0   :  { %v1789_v42 = vmul.f32 %v1575_v47, %v2773_v38  ;;  %v1471_v8 = vsel %vm96_vm0, %v1406_v45, 0.0 }
 0x2f1   :  { %v1579_v51 = vmul.f32 0.5, %v1578_v14  ;;  %1472 = vadd.xlane.f32.xlu0 %v1471_v8  ;;  %v1431_v61 = vpop.xlane.xlu1 %1430  ;;  %v1319_v34 = vpop.xlane.xlu0 %1318 }
 0x2f2   :  { %v1818_v48 = vmul.f32 %v2913_v24, %v1789_v42  ;;  %v1492_v40 = vmul.f32 %v1431_v61, %v2732_v63  ;;  %v1357_v30 = vmul.f32 %v2732_v63, %v1319_v34 }
 0x2f3   :  { %v1580_v62 = vsub.f32 1.5, %v1579_v51 }
 0x2f4   :  { %v2045_v59 = vpop.eup %2044  ;;  %v1847_v3 = vadd.f32 %v2920_v31, %v1818_v48  ;;  %v1517_v26 = vadd.f32 1e-05, %v1492_v40  ;;  %v2974_v38 = vsub.f32 %v2811_v23, %v1357_v30 }
 0x2f5   :  { %v1581_v22 = vmul.f32 %v2043_v35, %v1580_v62  ;;  %v1587_v44 = vmul.f32 %v2045_v59, %v1516_v1  ;;  %vm1593_vm6 = vweird.f32 %v2045_v59 }
 0x2f6   :  { %1872 = vst.msk [vmem:[%s3182_s13 + $0x18] sm:$0xff] %vm96_vm0, %v1847_v3  ;;  %2046 = vrsqrt.f32 %v1517_v26  ;;  %v1407_v39 = vmul.f32 %v2974_v38, %v2974_v38  ;;  %vm1594_vm8 = vmor %vm1592_vm7, %vm1593_vm6  ;;  %vm1602_vm10 = vweird.f32 %v1517_v26 }
 0x2f7   :  { %v1585_v15 = vsel %vm1584_vm2, %v2043_v35, %v1581_v22  ;;  %v1588_v0 = vmul.f32 %v2045_v59, %v1587_v44 }
 0x2f8   :  { %v1790_v50 = vmul.f32 %v1585_v15, %v2785_v53  ;;  %v1474_v23 = vsel %vm96_vm0, %v1407_v39, 0.0 }
 0x2f9   :  { %v1589_v19 = vmul.f32 0.5, %v1588_v0  ;;  %v1322_v46 = vpop.xlane.xlu1 %1321  ;;  %1475 = vadd.xlane.f32.xlu1 %v1474_v23 }
 0x2fa   :  { %v1819_v21 = vmul.f32 %v2913_v24, %v1790_v50  ;;  %v1358_v25 = vmul.f32 %v2732_v63, %v1322_v46 }
 0x2fb   :  { %v1590_v5 = vsub.f32 1.5, %v1589_v19 }
 0x2fc   :  { %v2047_v55 = vpop.eup %2046  ;;  %v1848_v20 = vadd.f32 %v2920_v31, %v1819_v21  ;;  %v2988_v52 = vsub.f32 %v2819_v60, %v1358_v25 }
 0x2fd   :  { %v1591_v29 = vmul.f32 %v2045_v59, %v1590_v5  ;;  %v1597_v53 = vmul.f32 %v2047_v55, %v1517_v26  ;;  %vm1603_vm9 = vweird.f32 %v2047_v55 }
 0x2fe   :  { %1873 = vst.msk [vmem:[%s3182_s13 + $0x20] sm:$0xff] %vm96_vm0, %v1848_v20  ;;  %v1325_v2 = vpop.xlane.xlu2 %1324  ;;  %v1408_v32 = vmul.f32 %v2988_v52, %v2988_v52  ;;  %vm1604_vm11 = vmor %vm1602_vm10, %vm1603_vm9 }
 0x2ff   :  { %v1595_v41 = vsel %vm1594_vm8, %v2045_v59, %v1591_v29  ;;  %v1598_v6 = vmul.f32 %v2047_v55, %v1597_v53  ;;  %v1359_v35 = vmul.f32 %v2732_v63, %v1325_v2 }
 0x300   :  { %v1791_v60 = vmul.f32 %v1595_v41, %v2797_v7  ;;  %v1477_v49 = vsel %vm96_vm0, %v1408_v32, 0.0 }
 0x301   :  { %v1599_v1 = vmul.f32 0.5, %v1598_v6  ;;  %v3000_v43 = vsub.f32 %v2825_v36, %v1359_v35  ;;  %1478 = vadd.xlane.f32.xlu2 %v1477_v49 }
 0x302   :  { %v1820_v11 = vmul.f32 %v2913_v24, %v1791_v60 }
 0x303   :  { %v1600_v45 = vsub.f32 1.5, %v1599_v1  ;;  %v1409_v47 = vmul.f32 %v3000_v43, %v3000_v43 }
 0x304   :  { %v1849_v14 = vadd.f32 %v2920_v31, %v1820_v11 }
 0x305   :  { %v1601_v42 = vmul.f32 %v2047_v55, %v1600_v45  ;;  %v1480_v7 = vsel %vm96_vm0, %v1409_v47, 0.0 }
 0x306   :  { %1874 = vst.msk [vmem:[%s3182_s13 + $0x28] sm:$0xff] %vm96_vm0, %v1849_v14  ;;  %1481 = vadd.xlane.f32.xlu0 %v1480_v7  ;;  %v1434_v36 = vpop.xlane.xlu2 %1433  ;;  %v1328_v8 = vpop.xlane.xlu0 %1327 }
 0x307   :  { %v1605_v51 = vsel %vm1604_vm11, %v2047_v55, %v1601_v42  ;;  %v1493_v61 = vmul.f32 %v1434_v36, %v2732_v63  ;;  %v1360_v34 = vmul.f32 %v2732_v63, %v1328_v8 }
 0x308   :  { %v1792_v48 = vmul.f32 %v1605_v51, %v2809_v13 }
 0x309   :  { %v1518_v40 = vadd.f32 1e-05, %v1493_v61  ;;  %v3015_v30 = vsub.f32 %v2840_v56, %v1360_v34  ;;  %v1440_v62 = vpop.xlane.xlu1 %1439 }
 0x30a   :  { %v1821_v59 = vmul.f32 %v2913_v24, %v1792_v48  ;;  %v1495_v3 = vmul.f32 %v1440_v62, %v2732_v63 }
 0x30b   :  { %2048 = vrsqrt.f32 %v1518_v40  ;;  %v1410_v26 = vmul.f32 %v3015_v30, %v3015_v30  ;;  %vm1612_vm13 = vweird.f32 %v1518_v40 }
 0x30c   :  { %v1850_v22 = vadd.f32 %v2920_v31, %v1821_v59  ;;  %v1520_v44 = vadd.f32 1e-05, %v1495_v3 }
 0x30d   :  { %v1483_v39 = vsel %vm96_vm0, %v1410_v26, 0.0 }
 0x30e   :  { %1875 = vst.msk [vmem:[%s3182_s13 + $0x30] sm:$0xff] %vm96_vm0, %v1850_v22  ;;  %2050 = vrsqrt.f32 %v1520_v44  ;;  %1484 = vadd.xlane.f32.xlu1 %v1483_v39  ;;  %v1437_v13 = vpop.xlane.xlu0 %1436  ;;  %vm1632_vm1 = vweird.f32 %v1520_v44 }
 0x30f   :  { %v1494_v56 = vmul.f32 %v1437_v13, %v2732_v63 }
 0x311   :  { %v2049_v15 = vpop.eup %2048  ;;  %v1519_v0 = vadd.f32 1e-05, %v1494_v56  ;;  %v1443_v50 = vpop.xlane.xlu2 %1442 }
 0x312   :  { %v1607_v23 = vmul.f32 %v2049_v15, %v1518_v40  ;;  %v1496_v19 = vmul.f32 %v1443_v50, %v2732_v63  ;;  %vm1613_vm12 = vweird.f32 %v2049_v15 }
 0x313   :  { %2052 = vrsqrt.f32 %v1519_v0  ;;  %vm1614_vm14 = vmor %vm1612_vm13, %vm1613_vm12  ;;  %vm1622_vm5 = vweird.f32 %v1519_v0 }
 0x314   :  { %v2051_v46 = vpop.eup %2050  ;;  %v1608_v21 = vmul.f32 %v2049_v15, %v1607_v23  ;;  %v1521_v25 = vadd.f32 1e-05, %v1496_v19 }
 0x315   :  { %v1627_v5 = vmul.f32 %v2051_v46, %v1520_v44  ;;  %vm1633_vm15 = vweird.f32 %v2051_v46 }
 0x316   :  { %v1609_v55 = vmul.f32 0.5, %v1608_v21  ;;  %2054 = vrsqrt.f32 %v1521_v25  ;;  %vm1634_vm3 = vmor %vm1632_vm1, %vm1633_vm15  ;;  %vm1642_vm7 = vweird.f32 %v1521_v25 }
 0x317   :  { %v1628_v20 = vmul.f32 %v2051_v46, %v1627_v5 }
 0x318   :  { %v1610_v29 = vsub.f32 1.5, %v1609_v55 }
 0x319   :  { %v2053_v53 = vpop.eup %2052  ;;  %v1629_v2 = vmul.f32 0.5, %v1628_v20  ;;  %v1446_v32 = vpop.xlane.xlu0 %1445 }
 0x31a   :  { %v1611_v41 = vmul.f32 %v2049_v15, %v1610_v29  ;;  %v1617_v6 = vmul.f32 %v2053_v53, %v1519_v0  ;;  %v1497_v35 = vmul.f32 %v1446_v32, %v2732_v63  ;;  %vm1623_vm4 = vweird.f32 %v2053_v53 }
 0x31b   :  { %v1630_v60 = vsub.f32 1.5, %v1629_v2  ;;  %vm1624_vm2 = vmor %vm1622_vm5, %vm1623_vm4 }
 0x31c   :  { %v2055_v49 = vpop.eup %2054  ;;  %v1615_v1 = vsel %vm1614_vm14, %v2049_v15, %v1611_v41  ;;  %v1618_v11 = vmul.f32 %v2053_v53, %v1617_v6  ;;  %v1522_v45 = vadd.f32 1e-05, %v1497_v35 }
 0x31d   :  { %v1793_v47 = vmul.f32 %v1615_v1, %v2828_v37  ;;  %v1631_v14 = vmul.f32 %v2051_v46, %v1630_v60  ;;  %v1637_v42 = vmul.f32 %v2055_v49, %v1521_v25  ;;  %vm1643_vm6 = vweird.f32 %v2055_v49 }
 0x31e   :  { %v1619_v7 = vmul.f32 0.5, %v1618_v11  ;;  %2056 = vrsqrt.f32 %v1522_v45  ;;  %vm1644_vm8 = vmor %vm1642_vm7, %vm1643_vm6  ;;  %vm1652_vm10 = vweird.f32 %v1522_v45 }
 0x31f   :  { %v1822_v36 = vmul.f32 %v2913_v24, %v1793_v47  ;;  %v1635_v8 = vsel %vm1634_vm3, %v2051_v46, %v1631_v14  ;;  %v1638_v51 = vmul.f32 %v2055_v49, %v1637_v42 }
 0x320   :  { %v1795_v61 = vmul.f32 %v1635_v8, %v2838_v54  ;;  %v1620_v34 = vsub.f32 1.5, %v1619_v7 }
 0x321   :  { %v1851_v48 = vadd.f32 %v2920_v31, %v1822_v36  ;;  %v1639_v40 = vmul.f32 0.5, %v1638_v51  ;;  %v1449_v62 = vpop.xlane.xlu1 %1448 }
 0x322   :  { %v1824_v37 = vmul.f32 %v2913_v24, %v1795_v61  ;;  %v1621_v59 = vmul.f32 %v2053_v53, %v1620_v34  ;;  %v1498_v3 = vmul.f32 %v1449_v62, %v2732_v63 }
 0x323   :  { %1876 = vst.msk [vmem:[%s3182_s13 + $0x38] sm:$0xff] %vm96_vm0, %v1851_v48  ;;  %v1640_v26 = vsub.f32 1.5, %v1639_v40 }
 0x324   :  { %v2057_v54 = vpop.eup %2056  ;;  %v1853_v22 = vadd.f32 %v2920_v31, %v1824_v37  ;;  %v1625_v44 = vsel %vm1624_vm2, %v2053_v53, %v1621_v59  ;;  %v1523_v39 = vadd.f32 1e-05, %v1498_v3 }
 0x325   :  { %v1794_v13 = vmul.f32 %v1625_v44, %v2843_v57  ;;  %v1641_v56 = vmul.f32 %v2055_v49, %v1640_v26  ;;  %v1647_v15 = vmul.f32 %v2057_v54, %v1522_v45  ;;  %vm1653_vm9 = vweird.f32 %v2057_v54 }
 0x326   :  { %1878 = vst.msk [vmem:[%s3182_s13 + $0x48] sm:$0xff] %vm96_vm0, %v1853_v22  ;;  %2058 = vrsqrt.f32 %v1523_v39  ;;  %vm1654_vm11 = vmor %vm1652_vm10, %vm1653_vm9  ;;  %vm1662_vm13 = vweird.f32 %v1523_v39 }
 0x327   :  { %v1823_v0 = vmul.f32 %v2913_v24, %v1794_v13  ;;  %v1645_v50 = vsel %vm1644_vm8, %v2055_v49, %v1641_v56  ;;  %v1648_v23 = vmul.f32 %v2057_v54, %v1647_v15 }
 0x328   :  { %v1796_v19 = vmul.f32 %v1645_v50, %v2855_v4 }
 0x329   :  { %v1852_v46 = vadd.f32 %v2920_v31, %v1823_v0  ;;  %v1649_v21 = vmul.f32 0.5, %v1648_v23  ;;  %v1452_v57 = vpop.xlane.xlu2 %1451 }
 0x32a   :  { %v1825_v25 = vmul.f32 %v2913_v24, %v1796_v19  ;;  %v1499_v5 = vmul.f32 %v1452_v57, %v2732_v63 }
 0x32b   :  { %1877 = vst.msk [vmem:[%s3182_s13 + $0x40] sm:$0xff] %vm96_vm0, %v1852_v46  ;;  %v1650_v55 = vsub.f32 1.5, %v1649_v21 }
 0x32c   :  { %v2059_v20 = vpop.eup %2058  ;;  %v1854_v29 = vadd.f32 %v2920_v31, %v1825_v25  ;;  %v1524_v53 = vadd.f32 1e-05, %v1499_v5 }
 0x32d   :  { %v1651_v4 = vmul.f32 %v2057_v54, %v1650_v55  ;;  %v1657_v2 = vmul.f32 %v2059_v20, %v1523_v39  ;;  %vm1663_vm12 = vweird.f32 %v2059_v20 }
 0x32e   :  { %1879 = vst.msk [vmem:[%s3182_s13 + $0x50] sm:$0xff] %vm96_vm0, %v1854_v29  ;;  %2060 = vrsqrt.f32 %v1524_v53  ;;  %vm1664_vm14 = vmor %vm1662_vm13, %vm1663_vm12  ;;  %vm1672_vm1 = vweird.f32 %v1524_v53 }
 0x32f   :  { %v1655_v32 = vsel %vm1654_vm11, %v2057_v54, %v1651_v4  ;;  %v1658_v41 = vmul.f32 %v2059_v20, %v1657_v2 }
 0x330   :  { %v1797_v6 = vmul.f32 %v1655_v32, %v2863_v17 }
 0x331   :  { %v1659_v35 = vmul.f32 0.5, %v1658_v41  ;;  %v1455_v60 = vpop.xlane.xlu0 %1454 }
 0x332   :  { %v1826_v49 = vmul.f32 %v2913_v24, %v1797_v6  ;;  %v1500_v1 = vmul.f32 %v1455_v60, %v2732_v63 }
 0x333   :  { %v1660_v11 = vsub.f32 1.5, %v1659_v35 }
 0x334   :  { %v2061_v45 = vpop.eup %2060  ;;  %v1855_v47 = vadd.f32 %v2920_v31, %v1826_v49  ;;  %v1525_v14 = vadd.f32 1e-05, %v1500_v1 }
 0x335   :  { %v1661_v42 = vmul.f32 %v2059_v20, %v1660_v11  ;;  %v1667_v7 = vmul.f32 %v2061_v45, %v1524_v53  ;;  %vm1673_vm15 = vweird.f32 %v2061_v45 }
 0x336   :  { %1880 = vst.msk [vmem:[%s3182_s13 + $0x58] sm:$0xff] %vm96_vm0, %v1855_v47  ;;  %2062 = vrsqrt.f32 %v1525_v14  ;;  %vm1674_vm3 = vmor %vm1672_vm1, %vm1673_vm15  ;;  %vm1682_vm5 = vweird.f32 %v1525_v14 }
 0x337   :  { %v1665_v17 = vsel %vm1664_vm14, %v2059_v20, %v1661_v42  ;;  %v1668_v36 = vmul.f32 %v2061_v45, %v1667_v7 }
 0x338   :  { %v1798_v8 = vmul.f32 %v1665_v17, %v2870_v58 }
 0x339   :  { %v1669_v51 = vmul.f32 0.5, %v1668_v36  ;;  %v1458_v61 = vpop.xlane.xlu1 %1457 }
 0x33a   :  { %v1827_v34 = vmul.f32 %v2913_v24, %v1798_v8  ;;  %v1501_v48 = vmul.f32 %v1458_v61, %v2732_v63 }
 0x33b   :  { %v1670_v40 = vsub.f32 1.5, %v1669_v51 }
 0x33c   :  { %v2063_v62 = vpop.eup %2062  ;;  %v1856_v37 = vadd.f32 %v2920_v31, %v1827_v34  ;;  %v1526_v59 = vadd.f32 1e-05, %v1501_v48 }
 0x33d   :  { %v1671_v3 = vmul.f32 %v2061_v45, %v1670_v40  ;;  %v1677_v26 = vmul.f32 %v2063_v62, %v1525_v14  ;;  %vm1683_vm4 = vweird.f32 %v2063_v62 }
 0x33e   :  { %1881 = vst.msk [vmem:[%s3182_s13 + $0x60] sm:$0xff] %vm96_vm0, %v1856_v37  ;;  %2064 = vrsqrt.f32 %v1526_v59  ;;  %vm1684_vm2 = vmor %vm1682_vm5, %vm1683_vm4  ;;  %vm1692_vm7 = vweird.f32 %v1526_v59 }
 0x33f   :  { %v1675_v58 = vsel %vm1674_vm3, %v2061_v45, %v1671_v3  ;;  %v1678_v54 = vmul.f32 %v2063_v62, %v1677_v26 }
 0x340   :  { %v1799_v22 = vmul.f32 %v1675_v58, %v2877_v27 }
 0x341   :  { %v1679_v44 = vmul.f32 0.5, %v1678_v54 }
 0x342   :  { %v1828_v39 = vmul.f32 %v2913_v24, %v1799_v22 }
 0x343   :  { %v1680_v13 = vsub.f32 1.5, %v1679_v44 }
 0x344   :  { %v2065_v56 = vpop.eup %2064  ;;  %v1857_v15 = vadd.f32 %v2920_v31, %v1828_v39  ;;  %v1461_v0 = vpop.xlane.xlu2 %1460 }
 0x345   :  { %v1681_v50 = vmul.f32 %v2063_v62, %v1680_v13  ;;  %v1687_v23 = vmul.f32 %v2065_v56, %v1526_v59  ;;  %v1502_v19 = vmul.f32 %v1461_v0, %v2732_v63  ;;  %vm1693_vm6 = vweird.f32 %v2065_v56 }
 0x346   :  { %1882 = vst.msk [vmem:[%s3182_s13 + $0x68] sm:$0xff] %vm96_vm0, %v1857_v15  ;;  %vm1694_vm8 = vmor %vm1692_vm7, %vm1693_vm6 }
 0x347   :  { %v1685_v27 = vsel %vm1684_vm2, %v2063_v62, %v1681_v50  ;;  %v1688_v46 = vmul.f32 %v2065_v56, %v1687_v23  ;;  %v1527_v21 = vadd.f32 1e-05, %v1502_v19 }
 0x348   :  { %v1800_v57 = vmul.f32 %v1685_v27, %v2884_v33 }
 0x349   :  { %v1689_v25 = vmul.f32 0.5, %v1688_v46  ;;  %2066 = vrsqrt.f32 %v1527_v21  ;;  %vm1702_vm10 = vweird.f32 %v1527_v21 }
 0x34a   :  { %v1829_v5 = vmul.f32 %v2913_v24, %v1800_v57 }
 0x34b   :  { %v1690_v55 = vsub.f32 1.5, %v1689_v25 }
 0x34c   :  { %v1858_v20 = vadd.f32 %v2920_v31, %v1829_v5  ;;  %v1464_v29 = vpop.xlane.xlu0 %1463 }
 0x34d   :  { %v1691_v53 = vmul.f32 %v2065_v56, %v1690_v55  ;;  %v1503_v4 = vmul.f32 %v1464_v29, %v2732_v63 }
 0x34e   :  { %1883 = vst.msk [vmem:[%s3182_s13 + $0x70] sm:$0xff] %vm96_vm0, %v1858_v20 }
 0x34f   :  { %v2067_v33 = vpop.eup %2066  ;;  %v1695_v2 = vsel %vm1694_vm8, %v2065_v56, %v1691_v53  ;;  %v1528_v32 = vadd.f32 1e-05, %v1503_v4 }
 0x350   :  { %v1801_v41 = vmul.f32 %v1695_v2, %v2891_v28  ;;  %v1697_v6 = vmul.f32 %v2067_v33, %v1527_v21  ;;  %vm1703_vm9 = vweird.f32 %v2067_v33 }
 0x351   :  { %2068 = vrsqrt.f32 %v1528_v32  ;;  %vm1704_vm11 = vmor %vm1702_vm10, %vm1703_vm9  ;;  %vm1712_vm13 = vweird.f32 %v1528_v32 }
 0x352   :  { %v1830_v35 = vmul.f32 %v2913_v24, %v1801_v41  ;;  %v1698_v60 = vmul.f32 %v2067_v33, %v1697_v6 }
 0x354   :  { %v1859_v49 = vadd.f32 %v2920_v31, %v1830_v35  ;;  %v1699_v1 = vmul.f32 0.5, %v1698_v60  ;;  %v1467_v11 = vpop.xlane.xlu1 %1466 }
 0x355   :  { %v1504_v45 = vmul.f32 %v1467_v11, %v2732_v63 }
 0x356   :  { %1884 = vst.msk [vmem:[%s3182_s13 + $0x78] sm:$0xff] %vm96_vm0, %v1859_v49  ;;  %v1700_v47 = vsub.f32 1.5, %v1699_v1 }
 0x357   :  { %v2069_v14 = vpop.eup %2068  ;;  %v1529_v28 = vadd.f32 1e-05, %v1504_v45 }
 0x358   :  { %v1701_v42 = vmul.f32 %v2067_v33, %v1700_v47  ;;  %v1707_v7 = vmul.f32 %v2069_v14, %v1528_v32  ;;  %vm1713_vm12 = vweird.f32 %v2069_v14 }
 0x359   :  { %2070 = vrsqrt.f32 %v1529_v28  ;;  %vm1714_vm14 = vmor %vm1712_vm13, %vm1713_vm12  ;;  %vm1722_vm1 = vweird.f32 %v1529_v28 }
 0x35a   :  { %v1705_v17 = vsel %vm1704_vm11, %v2067_v33, %v1701_v42  ;;  %v1708_v36 = vmul.f32 %v2069_v14, %v1707_v7 }
 0x35b   :  { %v1802_v8 = vmul.f32 %v1705_v17, %v2900_v12 }
 0x35c   :  { %v1709_v51 = vmul.f32 0.5, %v1708_v36  ;;  %v1470_v61 = vpop.xlane.xlu2 %1469 }
 0x35d   :  { %v1831_v34 = vmul.f32 %v2913_v24, %v1802_v8  ;;  %v1505_v48 = vmul.f32 %v1470_v61, %v2732_v63 }
 0x35e   :  { %v1710_v40 = vsub.f32 1.5, %v1709_v51 }
 0x35f   :  { %v2071_v62 = vpop.eup %2070  ;;  %v1860_v37 = vadd.f32 %v2920_v31, %v1831_v34  ;;  %v1530_v59 = vadd.f32 1e-05, %v1505_v48 }
 0x360   :  { %v1711_v3 = vmul.f32 %v2069_v14, %v1710_v40  ;;  %v1717_v26 = vmul.f32 %v2071_v62, %v1529_v28  ;;  %vm1723_vm15 = vweird.f32 %v2071_v62 }
 0x361   :  { %1885 = vst.msk [vmem:[%s3182_s13 + $0x80] sm:$0xff] %vm96_vm0, %v1860_v37  ;;  %2072 = vrsqrt.f32 %v1530_v59  ;;  %vm1724_vm3 = vmor %vm1722_vm1, %vm1723_vm15  ;;  %vm1732_vm5 = vweird.f32 %v1530_v59 }
 0x362   :  { %v1715_v12 = vsel %vm1714_vm14, %v2069_v14, %v1711_v3  ;;  %v1718_v58 = vmul.f32 %v2071_v62, %v1717_v26 }
 0x363   :  { %v1803_v54 = vmul.f32 %v1715_v12, %v2908_v18 }
 0x364   :  { %v1719_v22 = vmul.f32 0.5, %v1718_v58  ;;  %v1473_v44 = vpop.xlane.xlu0 %1472 }
 0x365   :  { %v1832_v39 = vmul.f32 %v2913_v24, %v1803_v54  ;;  %v1506_v13 = vmul.f32 %v1473_v44, %v2732_v63 }
 0x366   :  { %v1720_v56 = vsub.f32 1.5, %v1719_v22 }
 0x367   :  { %v2073_v15 = vpop.eup %2072  ;;  %v1861_v0 = vadd.f32 %v2920_v31, %v1832_v39  ;;  %v1531_v50 = vadd.f32 1e-05, %v1506_v13 }
 0x368   :  { %v1721_v23 = vmul.f32 %v2071_v62, %v1720_v56  ;;  %v1727_v19 = vmul.f32 %v2073_v15, %v1530_v59  ;;  %vm1733_vm4 = vweird.f32 %v2073_v15 }
 0x369   :  { %1886 = vst.msk [vmem:[%s3182_s13 + $0x88] sm:$0xff] %vm96_vm0, %v1861_v0  ;;  %2074 = vrsqrt.f32 %v1531_v50  ;;  %vm1734_vm2 = vmor %vm1732_vm5, %vm1733_vm4  ;;  %vm1742_vm7 = vweird.f32 %v1531_v50 }
 0x36a   :  { %v1725_v18 = vsel %vm1724_vm3, %v2071_v62, %v1721_v23  ;;  %v1728_v27 = vmul.f32 %v2073_v15, %v1727_v19 }
 0x36b   :  { %v1804_v46 = vmul.f32 %v1725_v18, %v2929_v9 }
 0x36c   :  { %v1729_v21 = vmul.f32 0.5, %v1728_v27  ;;  %v1476_v57 = vpop.xlane.xlu1 %1475 }
 0x36d   :  { %v1833_v25 = vmul.f32 %v2913_v24, %v1804_v46  ;;  %v1507_v5 = vmul.f32 %v1476_v57, %v2732_v63 }
 0x36e   :  { %v1730_v55 = vsub.f32 1.5, %v1729_v21 }
 0x36f   :  { %v2075_v20 = vpop.eup %2074  ;;  %v1862_v29 = vadd.f32 %v2920_v31, %v1833_v25  ;;  %v1532_v53 = vadd.f32 1e-05, %v1507_v5 }
 0x370   :  { %v1731_v4 = vmul.f32 %v2073_v15, %v1730_v55  ;;  %v1737_v33 = vmul.f32 %v2075_v20, %v1531_v50  ;;  %vm1743_vm6 = vweird.f32 %v2075_v20 }
 0x371   :  { %1887 = vst.msk [vmem:[%s3182_s13 + $0x90] sm:$0xff] %vm96_vm0, %v1862_v29  ;;  %2076 = vrsqrt.f32 %v1532_v53  ;;  %vm1744_vm8 = vmor %vm1742_vm7, %vm1743_vm6  ;;  %vm1752_vm10 = vweird.f32 %v1532_v53 }
 0x372   :  { %v1735_v9 = vsel %vm1734_vm2, %v2073_v15, %v1731_v4  ;;  %v1738_v2 = vmul.f32 %v2075_v20, %v1737_v33 }
 0x373   :  { %v1805_v32 = vmul.f32 %v1735_v9, %v2944_v16 }
 0x374   :  { %v1739_v41 = vmul.f32 0.5, %v1738_v2  ;;  %v1479_v6 = vpop.xlane.xlu2 %1478 }
 0x375   :  { %v1834_v35 = vmul.f32 %v2913_v24, %v1805_v32  ;;  %v1508_v60 = vmul.f32 %v1479_v6, %v2732_v63 }
 0x376   :  { %v1740_v49 = vsub.f32 1.5, %v1739_v41 }
 0x377   :  { %v2077_v1 = vpop.eup %2076  ;;  %v1863_v11 = vadd.f32 %v2920_v31, %v1834_v35  ;;  %v1533_v45 = vadd.f32 1e-05, %v1508_v60 }
 0x378   :  { %v1741_v47 = vmul.f32 %v2075_v20, %v1740_v49  ;;  %v1747_v14 = vmul.f32 %v2077_v1, %v1532_v53  ;;  %vm1753_vm9 = vweird.f32 %v2077_v1 }
 0x379   :  { %1888 = vst.msk [vmem:[%s3182_s13 + $0x98] sm:$0xff] %vm96_vm0, %v1863_v11  ;;  %2078 = vrsqrt.f32 %v1533_v45  ;;  %v1482_v16 = vpop.xlane.xlu0 %1481  ;;  %vm1754_vm11 = vmor %vm1752_vm10, %vm1753_vm9  ;;  %vm1762_vm13 = vweird.f32 %v1533_v45 }
 0x37a   :  { %v1745_v28 = vsel %vm1744_vm8, %v2075_v20, %v1741_v47  ;;  %v1748_v42 = vmul.f32 %v2077_v1, %v1747_v14  ;;  %v1509_v7 = vmul.f32 %v1482_v16, %v2732_v63 }
 0x37b   :  { %v1806_v17 = vmul.f32 %v1745_v28, %v2959_v10 }
 0x37c   :  { %v1749_v36 = vmul.f32 0.5, %v1748_v42  ;;  %v1534_v8 = vadd.f32 1e-05, %v1509_v7 }
 0x37d   :  { %v1835_v51 = vmul.f32 %v2913_v24, %v1806_v17 }
 0x37e   :  { %v1750_v61 = vsub.f32 1.5, %v1749_v36  ;;  %2080 = vrsqrt.f32 %v1534_v8  ;;  %vm1772_vm1 = vweird.f32 %v1534_v8 }
 0x37f   :  { %v2079_v34 = vpop.eup %2078  ;;  %v1864_v48 = vadd.f32 %v2920_v31, %v1835_v51 }
 0x380   :  { %v1751_v40 = vmul.f32 %v2077_v1, %v1750_v61  ;;  %v1757_v62 = vmul.f32 %v2079_v34, %v1533_v45  ;;  %vm1763_vm12 = vweird.f32 %v2079_v34 }
 0x381   :  { %1889 = vst.msk [vmem:[%s3182_s13 + $0xa0] sm:$0xff] %vm96_vm0, %v1864_v48  ;;  %v1485_v10 = vpop.xlane.xlu1 %1484  ;;  %vm1764_vm14 = vmor %vm1762_vm13, %vm1763_vm12 }
 0x382   :  { %v1755_v37 = vsel %vm1754_vm11, %v2077_v1, %v1751_v40  ;;  %v1758_v59 = vmul.f32 %v2079_v34, %v1757_v62  ;;  %v1510_v3 = vmul.f32 %v1485_v10, %v2732_v63 }
 0x383   :  { %v1807_v26 = vmul.f32 %v1755_v37, %v2974_v38 }
 0x384   :  { %v2081_v12 = vpop.eup %2080  ;;  %v1759_v58 = vmul.f32 0.5, %v1758_v59  ;;  %v1535_v54 = vadd.f32 1e-05, %v1510_v3 }
 0x385   :  { %v1836_v22 = vmul.f32 %v2913_v24, %v1807_v26  ;;  %v1767_v44 = vmul.f32 %v2081_v12, %v1534_v8  ;;  %vm1773_vm15 = vweird.f32 %v2081_v12 }
 0x386   :  { %v1760_v39 = vsub.f32 1.5, %v1759_v58  ;;  %2082 = vrsqrt.f32 %v1535_v54  ;;  %vm1774_vm3 = vmor %vm1772_vm1, %vm1773_vm15  ;;  %vm1782_vm5 = vweird.f32 %v1535_v54 }
 0x387   :  { %v1865_v13 = vadd.f32 %v2920_v31, %v1836_v22  ;;  %v1768_v56 = vmul.f32 %v2081_v12, %v1767_v44 }
 0x388   :  { %v1761_v15 = vmul.f32 %v2079_v34, %v1760_v39 }
 0x389   :  { %1890 = vst.msk [vmem:[%s3182_s13 + $0xa8] sm:$0xff] %vm96_vm0, %v1865_v13  ;;  %v1769_v63 = vmul.f32 0.5, %v1768_v56 }
 0x38a   :  { %v1765_v38 = vsel %vm1764_vm14, %v2079_v34, %v1761_v15 }
 0x38b   :  { %v1808_v0 = vmul.f32 %v1765_v38, %v2988_v52  ;;  %v1770_v50 = vsub.f32 1.5, %v1769_v63 }
 0x38c   :  { %v2083_v23 = vpop.eup %2082 }
 0x38d   :  { %v1837_v19 = vmul.f32 %v2913_v24, %v1808_v0  ;;  %v1771_v18 = vmul.f32 %v2081_v12, %v1770_v50  ;;  %v1777_v27 = vmul.f32 %v2083_v23, %v1535_v54  ;;  %vm1783_vm4 = vweird.f32 %v2083_v23 }
 0x38e   :  { %vm1784_vm2 = vmor %vm1782_vm5, %vm1783_vm4 }
 0x38f   :  { %v1866_v46 = vadd.f32 %v2920_v31, %v1837_v19  ;;  %v1775_v21 = vsel %vm1774_vm3, %v2081_v12, %v1771_v18  ;;  %v1778_v57 = vmul.f32 %v2083_v23, %v1777_v27 }
 0x390   :  { %v1809_v25 = vmul.f32 %v1775_v21, %v3000_v43 }
 0x391   :  { %1891 = vst.msk [vmem:[%s3182_s13 + $0xb0] sm:$0xff] %vm96_vm0, %v1866_v46  ;;  %v1779_v52 = vmul.f32 0.5, %v1778_v57 }
 0x392   :  { %v1838_v5 = vmul.f32 %v2913_v24, %v1809_v25 }
 0x393   :  { %v1780_v55 = vsub.f32 1.5, %v1779_v52 }
 0x394   :  { %v1867_v20 = vadd.f32 %v2920_v31, %v1838_v5 }
 0x395   :  { %v1781_v29 = vmul.f32 %v2083_v23, %v1780_v55 }
 0x396   :  { %1892 = vst.msk [vmem:[%s3182_s13 + $0xb8] sm:$0xff] %vm96_vm0, %v1867_v20 }
 0x397   :  { %v1785_v43 = vsel %vm1784_vm2, %v2083_v23, %v1781_v29 }
 0x398   :  { %v1810_v53 = vmul.f32 %v1785_v43, %v3015_v30 }
 0x39a   :  { %v1839_v4 = vmul.f32 %v2913_v24, %v1810_v53 }
 0x39c   :  { %v1868_v33 = vadd.f32 %v2920_v31, %v1839_v4 }
 0x39e   :  { %1893 = vst.msk [vmem:[%s3182_s13 + $0xc0] sm:$0xff] %vm96_vm0, %v1868_v33 }

</bundles_post_ra>
